<compile_context>
chip_gen: v7x
topology: tpu7x:2x2x1
jax: 0.10.0
libtpu: 0.0.40
codegen_flags: <defaults>
</compile_context>

<pallas_src>
import jax
import jax.numpy as jnp
from jax.experimental import pallas as pl
from jax.experimental.pallas import tpu as pltpu

H1 = 256       # first hidden width (per branch)
H2 = 128       # second hidden width
OUT_PAD = 128  # lane-dense output slab width (>= 1 + a_dim)


def a3c_kernel(
    x_ref,                 # (tb, s_dim) f32
    w1_ref, b1_ref,        # fused layer 1 [pi1 | v1]: (s_dim, 2*H1) f32, (1, 2*H1) f32
    w2_ref, b2_ref,        # fused layer 2 block-diag [[pi2,0],[0,v2]]: (2*H1, 2*H2) bf16, (1, 2*H2) f32
    w_pif_ref, b_pif_ref,  # (H2, a_dim) bf16, (1, a_dim) f32
    w_vf_ref,              # (1, H2) f32 row (value head on VPU+XLU)
    b_vf_ref,              # (1, 1) f32 in SMEM (scalar)
    out_ref,               # (tb, OUT_PAD) f32: [value | probs | zero pad]
):
    x = x_ref[...]

    # ---- fused first layer (shared LHS x), f32 for accuracy on raw states ----
    h1 = jnp.dot(x, w1_ref[...], preferred_element_type=jnp.float32) + b1_ref[...]
    h1 = jnp.maximum(h1, 0.0)

    # ---- fused second layer: one full-width (N=256) MXU pass, block-diag RHS ----
    h2 = jnp.dot(h1.astype(jnp.bfloat16), w2_ref[...],
                 preferred_element_type=jnp.float32) + b2_ref[...]
    h2 = jnp.maximum(h2, 0.0)
    hp = h2[:, :H2]   # policy branch (lane-aligned slice)
    hv = h2[:, H2:]   # value branch

    # ---- policy head + softmax ----
    z = jnp.dot(hp.astype(jnp.bfloat16), w_pif_ref[...],
                preferred_element_type=jnp.float32) + b_pif_ref[...]
    z = z - jnp.max(z, axis=-1, keepdims=True)
    e = jnp.exp(z)
    # exact reciprocal (EUP, nearly free) so probs sum to 1 for downstream sampling
    probs = e * pl.reciprocal(jnp.sum(e, axis=-1, keepdims=True))

    # ---- value head: N=1, keep it off the MXU (VPU multiply + XLU row-reduce) ----
    v = jnp.sum(hv * w_vf_ref[...], axis=-1, keepdims=True) + b_vf_ref[0, 0]

    # ---- single lane-dense store: [value | probs | zeros] -> one unmasked vst ----
    a_dim = probs.shape[1]
    pad = jnp.zeros((v.shape[0], OUT_PAD - 1 - a_dim), jnp.float32)
    out_ref[...] = jnp.concatenate([v, probs, pad], axis=-1).astype(out_ref.dtype)


def a3c_forward(x, params, *, batch_tile=1024):
    """x: (B, s_dim) float32. params: dict from init_params. Returns (values, probs)."""
    B, s_dim = x.shape
    a_dim = params["w_pif"].shape[1]
    assert 1 + a_dim <= OUT_PAD

    # Fused first-layer weights (shared input x); kept f32 (K = s_dim is tiny).
    w1 = jnp.concatenate([params["w_pi1"], params["w_v1"]], axis=1).astype(jnp.float32)
    b1 = jnp.concatenate([params["b_pi1"], params["b_v1"]], axis=1).astype(jnp.float32)

    # Fused second layer as a block-diagonal (2*H1, 2*H2) bf16 RHS.
    w2 = jnp.zeros((2 * H1, 2 * H2), jnp.float32)
    w2 = w2.at[:H1, :H2].set(params["w_pi2"])
    w2 = w2.at[H1:, H2:].set(params["w_v2"])
    w2 = w2.astype(jnp.bfloat16)
    b2 = jnp.concatenate([params["b_pi2"], params["b_v2"]], axis=1).astype(jnp.float32)

    w_pif = params["w_pif"].astype(jnp.bfloat16)
    b_pif = params["b_pif"].astype(jnp.float32)
    w_vf = params["w_vf"].reshape(1, H2).astype(jnp.float32)   # row for VPU mul + reduce
    b_vf = params["b_vf"].reshape(1, 1).astype(jnp.float32)    # scalar -> SMEM

    # Batch tiling: big tiles amortize the ~0.35us fixed per-grid-step cost.
    # Cap at 2048 so double-buffered I/O + intermediates stay well inside
    # v7x's 64 MiB VMEM (v5e/v6e have 128 MiB).
    batch_tile = max(16, min(int(batch_tile), 2048))
    if B >= batch_tile:
        tb = batch_tile
    else:
        tb = max(16, ((B + 15) // 16) * 16)   # bf16 activations -> 16-sublane floor (v5e)
    B_pad = ((B + tb - 1) // tb) * tb
    if B_pad != B:
        x = jnp.pad(x, ((0, B_pad - B), (0, 0)))
    grid = (B_pad // tb,)

    def resident(arr):
        # Full-array block, same block index every grid step -> stays VMEM-resident.
        return pl.BlockSpec(arr.shape, lambda i: (0, 0))

    in_specs = [
        pl.BlockSpec((tb, s_dim), lambda i: (i, 0)),
        resident(w1), resident(b1),
        resident(w2), resident(b2),
        resident(w_pif), resident(b_pif),
        resident(w_vf),
        pl.BlockSpec(memory_space=pltpu.MemorySpace.SMEM),   # b_vf scalar in SMEM
    ]
    out_specs = pl.BlockSpec((tb, OUT_PAD), lambda i: (i, 0))
    args = (x, w1, b1, w2, b2, w_pif, b_pif, w_vf, b_vf)

    def build(core_parallel):
        sem = (pltpu.CORE_PARALLEL if core_parallel else pltpu.PARALLEL,)
        return pl.pallas_call(
            a3c_kernel,
            out_shape=jax.ShapeDtypeStruct((B_pad, OUT_PAD), jnp.float32),
            grid=grid,
            in_specs=in_specs,
            out_specs=out_specs,
            compiler_params=pltpu.CompilerParams(
                dimension_semantics=sem,
                vmem_limit_bytes=32 << 20,   # plenty: <8 MiB used even at tb=2048
            ),
        )

    try:
        # CORE_PARALLEL actually shards batch tiles across TensorCores (v7x / megacore).
        out = jax.block_until_ready(build(core_parallel=True)(*args))
    except Exception:
        # Chip / JAX build without core-parallel grid support: plain sequential grid.
        out = build(core_parallel=False)(*args)

    out = out[:B, :1 + a_dim]
    values = out[:, :1]
    probs = out[:, 1:]
    return values, probs


def init_params(key, s_dim, a_dim):
    """Deterministic init mimicking nn.Linear default (uniform +/- 1/sqrt(fan_in)).
    Weights stored as (in, out); biases as (1, out) for in-kernel broadcast."""
    def linear(key, fan_in, fan_out):
        kw, kb = jax.random.split(key)
        bound = 1.0 / jnp.sqrt(fan_in)
        w = jax.random.uniform(kw, (fan_in, fan_out), jnp.float32, -bound, bound)
        b = jax.random.uniform(kb, (1, fan_out), jnp.float32, -bound, bound)
        return w, b

    keys = jax.random.split(key, 6)
    p = {}
    p["w_pi1"], p["b_pi1"] = linear(keys[0], s_dim, H1)
    p["w_pi2"], p["b_pi2"] = linear(keys[1], H1, H2)
    p["w_pif"], p["b_pif"] = linear(keys[2], H2, a_dim)
    p["w_v1"], p["b_v1"] = linear(keys[3], s_dim, H1)
    p["w_v2"], p["b_v2"] = linear(keys[4], H1, H2)
    p["w_vf"], p["b_vf"] = linear(keys[5], H2, 1)
    return p


def a3c_reference(x, params):
    """Pure-JAX f32 reference of the PyTorch forward."""
    h = jax.nn.relu(x @ params["w_pi1"] + params["b_pi1"])
    h = jax.nn.relu(h @ params["w_pi2"] + params["b_pi2"])
    probs = jax.nn.softmax(h @ params["w_pif"] + params["b_pif"], axis=-1)
    v = jax.nn.relu(x @ params["w_v1"] + params["b_v1"])
    v = jax.nn.relu(v @ params["w_v2"] + params["b_v2"])
    values = v @ params["w_vf"] + params["b_vf"]
    return values, probs


if __name__ == "__main__":
    key = jax.random.PRNGKey(0)
    k_params, k_x, k_x2 = jax.random.split(key, 3)

    s_dim, a_dim, batch = 16, 4, 8
    params = init_params(k_params, s_dim, a_dim)
    x = jax.random.normal(k_x, (batch, s_dim), jnp.float32)

    values, probs = a3c_forward(x, params)
    values = jax.block_until_ready(values)
    probs = jax.block_until_ready(probs)

    ref_values, ref_probs = a3c_reference(x, params)
    assert values.shape == (batch, 1)
    assert probs.shape == (batch, a_dim)
    # layer-1 in f32; layers 2/3 use bf16 weights with f32 accumulation.
    assert jnp.allclose(values, ref_values, atol=5e-2, rtol=5e-2)
    assert jnp.allclose(probs, ref_probs, atol=2e-2, rtol=2e-2)
    assert jnp.allclose(jnp.sum(probs, axis=-1), 1.0, atol=1e-3)

    # Larger batch: exercises the big-tile path (tb=1024, multi-step grid, padding).
    B_big = 2048 + 17
    xb = jax.random.normal(k_x2, (B_big, s_dim), jnp.float32)
    vb, pb = a3c_forward(xb, params)
    vb = jax.block_until_ready(vb)
    pb = jax.block_until_ready(pb)
    rvb, rpb = a3c_reference(xb, params)
    assert vb.shape == (B_big, 1) and pb.shape == (B_big, a_dim)
    assert jnp.allclose(vb, rvb, atol=5e-2, rtol=5e-2)
    assert jnp.allclose(pb, rpb, atol=2e-2, rtol=2e-2)

    print("KERNEL_OK")
</pallas_src>

<mosaic_0001>
module attributes {stable_mosaic.version = 11 : i64} {
  func.func @a3c_kernel(%arg0: i32, %arg1: memref<16x16xf32, #tpu.memory_space<vmem>>, %arg2: memref<16x512xf32, #tpu.memory_space<vmem>>, %arg3: memref<1x512xf32, #tpu.memory_space<vmem>>, %arg4: memref<512x256xbf16, #tpu.memory_space<vmem>>, %arg5: memref<1x256xf32, #tpu.memory_space<vmem>>, %arg6: memref<128x4xbf16, #tpu.memory_space<vmem>>, %arg7: memref<1x4xf32, #tpu.memory_space<vmem>>, %arg8: memref<1x128xf32, #tpu.memory_space<vmem>>, %arg9: memref<1x1xf32, #tpu.memory_space<smem>>, %arg10: memref<16x128xf32, #tpu.memory_space<vmem>>) attributes {dimension_semantics = [#tpu.dimension_semantics<core_parallel>], iteration_bounds = array<i64: 1>, scalar_prefetch = 0 : i64, scratch_operands = 0 : i64, tpu.core_type = #tpu.core_type<tc>, window_params = [{transform_indices = @transform_0, window_bounds = array<i64: 16, 16>}, {pipeline_mode = #tpu.pipeline_mode<synchronous>, transform_indices = @transform_1, window_bounds = array<i64: 16, 512>}, {pipeline_mode = #tpu.pipeline_mode<synchronous>, transform_indices = @transform_2, window_bounds = array<i64: 1, 512>}, {pipeline_mode = #tpu.pipeline_mode<synchronous>, transform_indices = @transform_3, window_bounds = array<i64: 512, 256>}, {pipeline_mode = #tpu.pipeline_mode<synchronous>, transform_indices = @transform_4, window_bounds = array<i64: 1, 256>}, {pipeline_mode = #tpu.pipeline_mode<synchronous>, transform_indices = @transform_5, window_bounds = array<i64: 128, 4>}, {pipeline_mode = #tpu.pipeline_mode<synchronous>, transform_indices = @transform_6, window_bounds = array<i64: 1, 4>}, {pipeline_mode = #tpu.pipeline_mode<synchronous>, transform_indices = @transform_7, window_bounds = array<i64: 1, 128>}, {transform_indices = @transform_8, window_bounds = array<i64: 1, 1>}, {transform_indices = @transform_9, window_bounds = array<i64: 16, 128>}]} {
    %c0 = arith.constant 0 : index
    %c0_0 = arith.constant 0 : index
    %0 = vector.load %arg1[%c0, %c0_0] : memref<16x16xf32, #tpu.memory_space<vmem>>, vector<16x16xf32>
    %c0_1 = arith.constant 0 : index
    %c0_2 = arith.constant 0 : index
    %1 = vector.load %arg2[%c0_1, %c0_2] : memref<16x512xf32, #tpu.memory_space<vmem>>, vector<16x512xf32>
    %cst = arith.constant dense<0.000000e+00> : vector<16x512xf32>
    %2 = tpu.matmul %0, %1, %cst {dimension_numbers = #tpu.dot_dimension_numbers<[1], [0], [0], [1], [0, 0, 1, 1], [], []>} : vector<16x16xf32>, vector<16x512xf32>, vector<16x512xf32> -> vector<16x512xf32>
    %c0_3 = arith.constant 0 : index
    %c0_4 = arith.constant 0 : index
    %3 = vector.load %arg3[%c0_3, %c0_4] : memref<1x512xf32, #tpu.memory_space<vmem>>, vector<1x512xf32>
    %4 = vector.broadcast %3 : vector<1x512xf32> to vector<16x512xf32>
    %5 = arith.addf %2, %4 : vector<16x512xf32>
    %cst_5 = arith.constant 0.000000e+00 : f32
    %6 = vector.broadcast %cst_5 : f32 to vector<16x512xf32>
    %7 = arith.maximumf %5, %6 : vector<16x512xf32>
    %8 = arith.truncf %7 : vector<16x512xf32> to vector<16x512xbf16>
    %c0_6 = arith.constant 0 : index
    %c0_7 = arith.constant 0 : index
    %9 = vector.load %arg4[%c0_6, %c0_7] : memref<512x256xbf16, #tpu.memory_space<vmem>>, vector<512x256xbf16>
    %cst_8 = arith.constant dense<0.000000e+00> : vector<16x256xf32>
    %10 = tpu.matmul %8, %9, %cst_8 {dimension_numbers = #tpu.dot_dimension_numbers<[1], [0], [0], [1], [0, 0, 1, 1], [], []>} : vector<16x512xbf16>, vector<512x256xbf16>, vector<16x256xf32> -> vector<16x256xf32>
    %c0_9 = arith.constant 0 : index
    %c0_10 = arith.constant 0 : index
    %11 = vector.load %arg5[%c0_9, %c0_10] : memref<1x256xf32, #tpu.memory_space<vmem>>, vector<1x256xf32>
    %12 = vector.broadcast %11 : vector<1x256xf32> to vector<16x256xf32>
    %13 = arith.addf %10, %12 : vector<16x256xf32>
    %cst_11 = arith.constant 0.000000e+00 : f32
    %14 = vector.broadcast %cst_11 : f32 to vector<16x256xf32>
    %15 = arith.maximumf %13, %14 : vector<16x256xf32>
    %16 = vector.extract_strided_slice %15 {offsets = [0, 0], sizes = [16, 128], strides = [1, 1]} : vector<16x256xf32> to vector<16x128xf32>
    %17 = vector.extract_strided_slice %15 {offsets = [0, 128], sizes = [16, 128], strides = [1, 1]} : vector<16x256xf32> to vector<16x128xf32>
    %18 = arith.truncf %16 : vector<16x128xf32> to vector<16x128xbf16>
    %c0_12 = arith.constant 0 : index
    %c0_13 = arith.constant 0 : index
    %19 = vector.load %arg6[%c0_12, %c0_13] : memref<128x4xbf16, #tpu.memory_space<vmem>>, vector<128x4xbf16>
    %cst_14 = arith.constant dense<0.000000e+00> : vector<16x4xf32>
    %20 = tpu.matmul %18, %19, %cst_14 {dimension_numbers = #tpu.dot_dimension_numbers<[1], [0], [0], [1], [0, 0, 1, 1], [], []>} : vector<16x128xbf16>, vector<128x4xbf16>, vector<16x4xf32> -> vector<16x4xf32>
    %c0_15 = arith.constant 0 : index
    %c0_16 = arith.constant 0 : index
    %21 = vector.load %arg7[%c0_15, %c0_16] : memref<1x4xf32, #tpu.memory_space<vmem>>, vector<1x4xf32>
    %22 = vector.broadcast %21 : vector<1x4xf32> to vector<16x4xf32>
    %23 = arith.addf %20, %22 : vector<16x4xf32>
    %cst_17 = arith.constant dense<0xFF800000> : vector<16xf32>
    %24 = vector.multi_reduction <maximumf>, %23, %cst_17 [1] : vector<16x4xf32> to vector<16xf32>
    %25 = vector.shape_cast %24 : vector<16xf32> to vector<16x1xf32>
    %26 = vector.broadcast %25 : vector<16x1xf32> to vector<16x4xf32>
    %27 = arith.subf %23, %26 : vector<16x4xf32>
    %28 = math.exp %27 : vector<16x4xf32>
    %cst_18 = arith.constant dense<0.000000e+00> : vector<16xf32>
    %29 = vector.multi_reduction <add>, %28, %cst_18 [1] : vector<16x4xf32> to vector<16xf32>
    %30 = vector.shape_cast %29 : vector<16xf32> to vector<16x1xf32>
    %31 = tpu.reciprocal %30 : vector<16x1xf32> -> vector<16x1xf32>
    %32 = vector.broadcast %31 : vector<16x1xf32> to vector<16x4xf32>
    %33 = arith.mulf %28, %32 : vector<16x4xf32>
    %c0_19 = arith.constant 0 : index
    %c0_20 = arith.constant 0 : index
    %34 = vector.load %arg8[%c0_19, %c0_20] : memref<1x128xf32, #tpu.memory_space<vmem>>, vector<1x128xf32>
    %35 = vector.broadcast %34 : vector<1x128xf32> to vector<16x128xf32>
    %36 = arith.mulf %17, %35 : vector<16x128xf32>
    %cst_21 = arith.constant dense<0.000000e+00> : vector<16xf32>
    %37 = vector.multi_reduction <add>, %36, %cst_21 [1] : vector<16x128xf32> to vector<16xf32>
    %38 = vector.shape_cast %37 : vector<16xf32> to vector<16x1xf32>
    %c0_22 = arith.constant 0 : index
    %c0_23 = arith.constant 0 : index
    %39 = memref.load %arg9[%c0_22, %c0_23] : memref<1x1xf32, #tpu.memory_space<smem>>
    %40 = vector.broadcast %39 : f32 to vector<16x1xf32>
    %41 = arith.addf %38, %40 : vector<16x1xf32>
    %cst_24 = arith.constant 0.000000e+00 : f32
    %42 = vector.broadcast %cst_24 : f32 to vector<16x123xf32>
    %43 = tpu.concatenate %41, %33, %42 in 1 : vector<16x1xf32>, vector<16x4xf32>, vector<16x123xf32> -> vector<16x128xf32>
    %c0_25 = arith.constant 0 : index
    %c0_26 = arith.constant 0 : index
    %44 = vector.load %arg10[%c0_25, %c0_26] : memref<16x128xf32, #tpu.memory_space<vmem>>, vector<16x128xf32>
    tpu.vector_store %arg10[%c0_25, %c0_26], %43 {strides = array<i32>} : memref<16x128xf32, #tpu.memory_space<vmem>>, vector<16x128xf32>,
    return
  }
  func.func @transform_0(%arg0: i32) -> (i32, i32) {
    %c0_i32 = arith.constant 0 : i32
    %c0_i32_0 = arith.constant 0 : i32
    return %arg0, %c0_i32 : i32, i32
  }
  func.func @transform_1(%arg0: i32) -> (i32, i32) {
    %c0_i32 = arith.constant 0 : i32
    %c0_i32_0 = arith.constant 0 : i32
    %c0_i32_1 = arith.constant 0 : i32
    return %c0_i32, %c0_i32_0 : i32, i32
  }
  func.func @transform_2(%arg0: i32) -> (i32, i32) {
    %c0_i32 = arith.constant 0 : i32
    %c0_i32_0 = arith.constant 0 : i32
    %c0_i32_1 = arith.constant 0 : i32
    return %c0_i32, %c0_i32_0 : i32, i32
  }
  func.func @transform_3(%arg0: i32) -> (i32, i32) {
    %c0_i32 = arith.constant 0 : i32
    %c0_i32_0 = arith.constant 0 : i32
    %c0_i32_1 = arith.constant 0 : i32
    return %c0_i32, %c0_i32_0 : i32, i32
  }
  func.func @transform_4(%arg0: i32) -> (i32, i32) {
    %c0_i32 = arith.constant 0 : i32
    %c0_i32_0 = arith.constant 0 : i32
    %c0_i32_1 = arith.constant 0 : i32
    return %c0_i32, %c0_i32_0 : i32, i32
  }
  func.func @transform_5(%arg0: i32) -> (i32, i32) {
    %c0_i32 = arith.constant 0 : i32
    %c0_i32_0 = arith.constant 0 : i32
    %c0_i32_1 = arith.constant 0 : i32
    return %c0_i32, %c0_i32_0 : i32, i32
  }
  func.func @transform_6(%arg0: i32) -> (i32, i32) {
    %c0_i32 = arith.constant 0 : i32
    %c0_i32_0 = arith.constant 0 : i32
    %c0_i32_1 = arith.constant 0 : i32
    return %c0_i32, %c0_i32_0 : i32, i32
  }
  func.func @transform_7(%arg0: i32) -> (i32, i32) {
    %c0_i32 = arith.constant 0 : i32
    %c0_i32_0 = arith.constant 0 : i32
    %c0_i32_1 = arith.constant 0 : i32
    return %c0_i32, %c0_i32_0 : i32, i32
  }
  func.func @transform_8(%arg0: i32) -> (i32, i32) {
    %c0_i32 = arith.constant 0 : i32
    %c0_i32_0 = arith.constant 0 : i32
    %c0_i32_1 = arith.constant 0 : i32
    return %c0_i32, %c0_i32_0 : i32, i32
  }
  func.func @transform_9(%arg0: i32) -> (i32, i32) {
    %c0_i32 = arith.constant 0 : i32
    %c0_i32_0 = arith.constant 0 : i32
    return %arg0, %c0_i32 : i32, i32
  }
}

module attributes {stable_mosaic.version = 11 : i64} {
  func.func @a3c_kernel(%arg0: i32, %arg1: memref<16x16xf32, #tpu.memory_space<vmem>>, %arg2: memref<16x512xf32, #tpu.memory_space<vmem>>, %arg3: memref<1x512xf32, #tpu.memory_space<vmem>>, %arg4: memref<512x256xbf16, #tpu.memory_space<vmem>>, %arg5: memref<1x256xf32, #tpu.memory_space<vmem>>, %arg6: memref<128x4xbf16, #tpu.memory_space<vmem>>, %arg7: memref<1x4xf32, #tpu.memory_space<vmem>>, %arg8: memref<1x128xf32, #tpu.memory_space<vmem>>, %arg9: memref<1x1xf32, #tpu.memory_space<smem>>, %arg10: memref<16x128xf32, #tpu.memory_space<vmem>>) attributes {dimension_semantics = [#tpu.dimension_semantics<parallel>], iteration_bounds = array<i64: 1>, scalar_prefetch = 0 : i64, scratch_operands = 0 : i64, tpu.core_type = #tpu.core_type<tc>, window_params = [{transform_indices = @transform_0, window_bounds = array<i64: 16, 16>}, {pipeline_mode = #tpu.pipeline_mode<synchronous>, transform_indices = @transform_1, window_bounds = array<i64: 16, 512>}, {pipeline_mode = #tpu.pipeline_mode<synchronous>, transform_indices = @transform_2, window_bounds = array<i64: 1, 512>}, {pipeline_mode = #tpu.pipeline_mode<synchronous>, transform_indices = @transform_3, window_bounds = array<i64: 512, 256>}, {pipeline_mode = #tpu.pipeline_mode<synchronous>, transform_indices = @transform_4, window_bounds = array<i64: 1, 256>}, {pipeline_mode = #tpu.pipeline_mode<synchronous>, transform_indices = @transform_5, window_bounds = array<i64: 128, 4>}, {pipeline_mode = #tpu.pipeline_mode<synchronous>, transform_indices = @transform_6, window_bounds = array<i64: 1, 4>}, {pipeline_mode = #tpu.pipeline_mode<synchronous>, transform_indices = @transform_7, window_bounds = array<i64: 1, 128>}, {transform_indices = @transform_8, window_bounds = array<i64: 1, 1>}, {transform_indices = @transform_9, window_bounds = array<i64: 16, 128>}]} {
    %c0 = arith.constant 0 : index
    %c0_0 = arith.constant 0 : index
    %0 = vector.load %arg1[%c0, %c0_0] : memref<16x16xf32, #tpu.memory_space<vmem>>, vector<16x16xf32>
    %c0_1 = arith.constant 0 : index
    %c0_2 = arith.constant 0 : index
    %1 = vector.load %arg2[%c0_1, %c0_2] : memref<16x512xf32, #tpu.memory_space<vmem>>, vector<16x512xf32>
    %cst = arith.constant dense<0.000000e+00> : vector<16x512xf32>
    %2 = tpu.matmul %0, %1, %cst {dimension_numbers = #tpu.dot_dimension_numbers<[1], [0], [0], [1], [0, 0, 1, 1], [], []>} : vector<16x16xf32>, vector<16x512xf32>, vector<16x512xf32> -> vector<16x512xf32>
    %c0_3 = arith.constant 0 : index
    %c0_4 = arith.constant 0 : index
    %3 = vector.load %arg3[%c0_3, %c0_4] : memref<1x512xf32, #tpu.memory_space<vmem>>, vector<1x512xf32>
    %4 = vector.broadcast %3 : vector<1x512xf32> to vector<16x512xf32>
    %5 = arith.addf %2, %4 : vector<16x512xf32>
    %cst_5 = arith.constant 0.000000e+00 : f32
    %6 = vector.broadcast %cst_5 : f32 to vector<16x512xf32>
    %7 = arith.maximumf %5, %6 : vector<16x512xf32>
    %8 = arith.truncf %7 : vector<16x512xf32> to vector<16x512xbf16>
    %c0_6 = arith.constant 0 : index
    %c0_7 = arith.constant 0 : index
    %9 = vector.load %arg4[%c0_6, %c0_7] : memref<512x256xbf16, #tpu.memory_space<vmem>>, vector<512x256xbf16>
    %cst_8 = arith.constant dense<0.000000e+00> : vector<16x256xf32>
    %10 = tpu.matmul %8, %9, %cst_8 {dimension_numbers = #tpu.dot_dimension_numbers<[1], [0], [0], [1], [0, 0, 1, 1], [], []>} : vector<16x512xbf16>, vector<512x256xbf16>, vector<16x256xf32> -> vector<16x256xf32>
    %c0_9 = arith.constant 0 : index
    %c0_10 = arith.constant 0 : index
    %11 = vector.load %arg5[%c0_9, %c0_10] : memref<1x256xf32, #tpu.memory_space<vmem>>, vector<1x256xf32>
    %12 = vector.broadcast %11 : vector<1x256xf32> to vector<16x256xf32>
    %13 = arith.addf %10, %12 : vector<16x256xf32>
    %cst_11 = arith.constant 0.000000e+00 : f32
    %14 = vector.broadcast %cst_11 : f32 to vector<16x256xf32>
    %15 = arith.maximumf %13, %14 : vector<16x256xf32>
    %16 = vector.extract_strided_slice %15 {offsets = [0, 0], sizes = [16, 128], strides = [1, 1]} : vector<16x256xf32> to vector<16x128xf32>
    %17 = vector.extract_strided_slice %15 {offsets = [0, 128], sizes = [16, 128], strides = [1, 1]} : vector<16x256xf32> to vector<16x128xf32>
    %18 = arith.truncf %16 : vector<16x128xf32> to vector<16x128xbf16>
    %c0_12 = arith.constant 0 : index
    %c0_13 = arith.constant 0 : index
    %19 = vector.load %arg6[%c0_12, %c0_13] : memref<128x4xbf16, #tpu.memory_space<vmem>>, vector<128x4xbf16>
    %cst_14 = arith.constant dense<0.000000e+00> : vector<16x4xf32>
    %20 = tpu.matmul %18, %19, %cst_14 {dimension_numbers = #tpu.dot_dimension_numbers<[1], [0], [0], [1], [0, 0, 1, 1], [], []>} : vector<16x128xbf16>, vector<128x4xbf16>, vector<16x4xf32> -> vector<16x4xf32>
    %c0_15 = arith.constant 0 : index
    %c0_16 = arith.constant 0 : index
    %21 = vector.load %arg7[%c0_15, %c0_16] : memref<1x4xf32, #tpu.memory_space<vmem>>, vector<1x4xf32>
    %22 = vector.broadcast %21 : vector<1x4xf32> to vector<16x4xf32>
    %23 = arith.addf %20, %22 : vector<16x4xf32>
    %cst_17 = arith.constant dense<0xFF800000> : vector<16xf32>
    %24 = vector.multi_reduction <maximumf>, %23, %cst_17 [1] : vector<16x4xf32> to vector<16xf32>
    %25 = vector.shape_cast %24 : vector<16xf32> to vector<16x1xf32>
    %26 = vector.broadcast %25 : vector<16x1xf32> to vector<16x4xf32>
    %27 = arith.subf %23, %26 : vector<16x4xf32>
    %28 = math.exp %27 : vector<16x4xf32>
    %cst_18 = arith.constant dense<0.000000e+00> : vector<16xf32>
    %29 = vector.multi_reduction <add>, %28, %cst_18 [1] : vector<16x4xf32> to vector<16xf32>
    %30 = vector.shape_cast %29 : vector<16xf32> to vector<16x1xf32>
    %31 = tpu.reciprocal %30 : vector<16x1xf32> -> vector<16x1xf32>
    %32 = vector.broadcast %31 : vector<16x1xf32> to vector<16x4xf32>
    %33 = arith.mulf %28, %32 : vector<16x4xf32>
    %c0_19 = arith.constant 0 : index
    %c0_20 = arith.constant 0 : index
    %34 = vector.load %arg8[%c0_19, %c0_20] : memref<1x128xf32, #tpu.memory_space<vmem>>, vector<1x128xf32>
    %35 = vector.broadcast %34 : vector<1x128xf32> to vector<16x128xf32>
    %36 = arith.mulf %17, %35 : vector<16x128xf32>
    %cst_21 = arith.constant dense<0.000000e+00> : vector<16xf32>
    %37 = vector.multi_reduction <add>, %36, %cst_21 [1] : vector<16x128xf32> to vector<16xf32>
    %38 = vector.shape_cast %37 : vector<16xf32> to vector<16x1xf32>
    %c0_22 = arith.constant 0 : index
    %c0_23 = arith.constant 0 : index
    %39 = memref.load %arg9[%c0_22, %c0_23] : memref<1x1xf32, #tpu.memory_space<smem>>
    %40 = vector.broadcast %39 : f32 to vector<16x1xf32>
    %41 = arith.addf %38, %40 : vector<16x1xf32>
    %cst_24 = arith.constant 0.000000e+00 : f32
    %42 = vector.broadcast %cst_24 : f32 to vector<16x123xf32>
    %43 = tpu.concatenate %41, %33, %42 in 1 : vector<16x1xf32>, vector<16x4xf32>, vector<16x123xf32> -> vector<16x128xf32>
    %c0_25 = arith.constant 0 : index
    %c0_26 = arith.constant 0 : index
    %44 = vector.load %arg10[%c0_25, %c0_26] : memref<16x128xf32, #tpu.memory_space<vmem>>, vector<16x128xf32>
    tpu.vector_store %arg10[%c0_25, %c0_26], %43 {strides = array<i32>} : memref<16x128xf32, #tpu.memory_space<vmem>>, vector<16x128xf32>,
    return
  }
  func.func @transform_0(%arg0: i32) -> (i32, i32) {
    %c0_i32 = arith.constant 0 : i32
    %c0_i32_0 = arith.constant 0 : i32
    return %arg0, %c0_i32 : i32, i32
  }
  func.func @transform_1(%arg0: i32) -> (i32, i32) {
    %c0_i32 = arith.constant 0 : i32
    %c0_i32_0 = arith.constant 0 : i32
    %c0_i32_1 = arith.constant 0 : i32
    return %c0_i32, %c0_i32_0 : i32, i32
  }
  func.func @transform_2(%arg0: i32) -> (i32, i32) {
    %c0_i32 = arith.constant 0 : i32
    %c0_i32_0 = arith.constant 0 : i32
    %c0_i32_1 = arith.constant 0 : i32
    return %c0_i32, %c0_i32_0 : i32, i32
  }
  func.func @transform_3(%arg0: i32) -> (i32, i32) {
    %c0_i32 = arith.constant 0 : i32
    %c0_i32_0 = arith.constant 0 : i32
    %c0_i32_1 = arith.constant 0 : i32
    return %c0_i32, %c0_i32_0 : i32, i32
  }
  func.func @transform_4(%arg0: i32) -> (i32, i32) {
    %c0_i32 = arith.constant 0 : i32
    %c0_i32_0 = arith.constant 0 : i32
    %c0_i32_1 = arith.constant 0 : i32
    return %c0_i32, %c0_i32_0 : i32, i32
  }
  func.func @transform_5(%arg0: i32) -> (i32, i32) {
    %c0_i32 = arith.constant 0 : i32
    %c0_i32_0 = arith.constant 0 : i32
    %c0_i32_1 = arith.constant 0 : i32
    return %c0_i32, %c0_i32_0 : i32, i32
  }
  func.func @transform_6(%arg0: i32) -> (i32, i32) {
    %c0_i32 = arith.constant 0 : i32
    %c0_i32_0 = arith.constant 0 : i32
    %c0_i32_1 = arith.constant 0 : i32
    return %c0_i32, %c0_i32_0 : i32, i32
  }
  func.func @transform_7(%arg0: i32) -> (i32, i32) {
    %c0_i32 = arith.constant 0 : i32
    %c0_i32_0 = arith.constant 0 : i32
    %c0_i32_1 = arith.constant 0 : i32
    return %c0_i32, %c0_i32_0 : i32, i32
  }
  func.func @transform_8(%arg0: i32) -> (i32, i32) {
    %c0_i32 = arith.constant 0 : i32
    %c0_i32_0 = arith.constant 0 : i32
    %c0_i32_1 = arith.constant 0 : i32
    return %c0_i32, %c0_i32_0 : i32, i32
  }
  func.func @transform_9(%arg0: i32) -> (i32, i32) {
    %c0_i32 = arith.constant 0 : i32
    %c0_i32_0 = arith.constant 0 : i32
    return %arg0, %c0_i32 : i32, i32
  }
}

</mosaic_0001>

<bundles_post_ra>
// kernel: tpu_custom_call.1
= control target key start
LH: loop header
LB: loop body
LE: loop exit
PB: predicated region body
PF: predicated region fallthrough
CT: control target
= control target key end

     0   :  { %s1336_s30 = sld [smem:[#allocation0]]   ;;  %s1480_s0 = inlined_call_operand.hbm [shape: f32[16,16], index: 0, kind: input, shape index: {}]   ;;  %s1481_s1 = inlined_call_operand.vmem [shape: f32[16,512], index: 1, kind: input, shape index: {}]   ;;  %s1482_s2 = inlined_call_operand.vmem [shape: f32[1,512], index: 2, kind: input, shape index: {}]   ;;  %s1483_s3 = inlined_call_operand.hbm [shape: bf16[512,256], index: 3, kind: input, shape index: {}]   ;;  %s1484_s4 = inlined_call_operand.vmem [shape: f32[1,256], index: 4, kind: input, shape index: {}]   ;;  %s1485_s5 = inlined_call_operand.vmem [shape: bf16[128,4], index: 5, kind: input, shape index: {}]   ;;  %s1486_s6 = inlined_call_operand.vmem [shape: f32[1,4], index: 6, kind: input, shape index: {}]   ;;  %s1487_s7 = inlined_call_operand.vmem [shape: f32[1,128], index: 7, kind: input, shape index: {}]   ;;  %s1488_s8 = inlined_call_operand.<no memory space> [shape: f32[1,1], index: 8, kind: input, shape index: {}]   ;;  %s1489_s9 = inlined_call_operand.hbm [shape: f32[16,128], index: 9, kind: output, shape index: {}]  }
   0x1   :  { %15 = vsyncpa [#allocation4], 0 }
   0x2   :  { %16 = vsyncpa [#allocation7], 0 }
   0x3   :  { %17 = vsyncpa [#allocation5], 0  ;;  %s1278_s14 = smov [#allocation3]   ;;  %s1204_s19 = scalar_lea.hbm %s1480_s0, 256 }
   0x4   :  { %s26_s15 = sshll.u32 %s1278_s14, 4  ;;  %s27_s15 = int_to_ptr.vmem [resolvable:$true] %s26_s15 }
   0x6   :  { %s1035_s10 = sshll.u32 %s1336_s30, 8 }
   0x7   :  { %s25_s13 = scalar_lea.hbm %s1480_s0, %s1035_s10 }
   0x8   :  { %s1202_s16 = scalar_lea.hbm %s25_s13, 256  ;;  %p1205_p1 = scmp.lt.u32.totalorder %s25_s13, %s1480_s0 }
   0x9   :  { %p1203_p0 = scmp.ne.s32.totalorder %s25_s13, %s1202_s16  ;;  %p1206_p2 = scmp.lt.u32.totalorder %s1204_s19, %s1202_s16 }
   0xa   :  { %p1208_p4 = scmp.lt.u32.totalorder %s1202_s16, %s25_s13 }
   0xb   :  { %p1207_p3 = por %p1206_p2, %p1205_p1 }
   0xd   :  { %p1209_p5 = por %p1208_p4, %p1207_p3 }
   0xf   :  { %p1210_p6 = pnand %p1209_p5, %p1203_p0 }
  0x11   :  { %1213 = shalt.err (!%p1210_p6)
}
  0x12   :  { %s1214_s22 = scalar_lea.vmem %s27_s15, 256  ;;  %p1219_p8 = scmp.lt.s32.totalorder %s27_s15, %s27_s15 }
  0x13   :  { %p1215_p7 = scmp.ne.s32.totalorder %s27_s15, %s1214_s22  ;;  %p1220_p9 = scmp.lt.s32.totalorder %s1214_s22, %s1214_s22 }
  0x15   :  { %p1221_p10 = por %p1220_p9, %p1219_p8 }
  0x17   :  { %p1222_p11 = pnand %p1221_p10, %p1215_p7 }
  0x19   :  { %1225 = shalt.err (!%p1222_p11)
}
  0x1a   :  { %s1279_s23 = smov 128   ;;  %s1280_s24 = smov 8  }
  0x1b   :  { %32 = dma.hbm_to_vmem [thread:$0]  %s25_s13, 256, %s27_s15, [#allocation4], %s1279_s23, %s1279_s23, %s1280_s24  }
  0x1c   :  { %s1281_s0 = smov [#allocation6]   ;;  %s1226_s28 = scalar_lea.hbm %s1483_s3, 8192 }
  0x1d   :  { %s42_s25 = sshll.u32 %s1281_s0, 4  ;;  %p1227_p12 = scmp.ne.s32.totalorder %s1483_s3, %s1226_s28  ;;  %s43_s25 = int_to_ptr.vmem [resolvable:$true] %s42_s25 }
  0x1e   :  { %p1230_p13 = scmp.lt.u32.totalorder %s1226_s28, %s1483_s3 }
  0x20   :  { %p1232_p0 = pnand %p1230_p13, %p1227_p12 }
  0x22   :  { %1235 = shalt.err (!%p1232_p0)
}
  0x23   :  { %s1236_s16 = scalar_lea.vmem %s43_s25, 8192  ;;  %p1241_p2 = scmp.lt.s32.totalorder %s43_s25, %s43_s25 }
  0x24   :  { %p1237_p1 = scmp.ne.s32.totalorder %s43_s25, %s1236_s16  ;;  %p1242_p3 = scmp.lt.s32.totalorder %s1236_s16, %s1236_s16 }
  0x26   :  { %p1243_p4 = por %p1242_p3, %p1241_p2 }
  0x28   :  { %p1244_p5 = pnand %p1243_p4, %p1237_p1 }
  0x2a   :  { %1247 = shalt.err (!%p1244_p5)
}
  0x2b   :  { %48 = dma.hbm_to_vmem [thread:$0]  %s1483_s3, 8192, %s43_s25, [#allocation7], %s1279_s23, %s1279_s23, %s1280_s24  }
  0x2c   :  { %1272 = dma.done.wait [#allocation4], 256  }
  0x2d   :  { %1273 = vsyncadd [#allocation4], 4294967040 }
  0x2e   :  { %1274 = dma.done.wait [#allocation7], 8192  }
  0x2f   :  { %1275 = vsyncadd [#allocation7], 4294959104  ;;  %v1282_v0 = vmov 0.0   ;;  %v71_v1 = vld [vmem:[%s1481_s1 + $0x8] sm:$0xff]  ;;  %v70_v3 = vld [vmem:[%s1481_s1] sm:$0xff]  ;;  %vm100_vm0 = vcmask 130048   ;;  %s935_s18 = scalar_lea.hbm %s1489_s9, %s1035_s10 }
  0x30   :  { %171 = vmatprep.mubr.f32.mxu0 %v1282_v0  ;;  %v75_v2 = vld [vmem:[%s1481_s1 + $0x28] sm:$0xff]  ;;  %v74_v5 = vld [vmem:[%s1481_s1 + $0x20] sm:$0xff]  ;;  %v73_v6 = vld [vmem:[%s1481_s1 + $0x18] sm:$0xff]  ;;  %vm1283_vm1 = vmmov 0   ;;  %vm872_vm2 = vcmask 31744   ;;  %vm920_vm3 = vcmask 7168  }
  0x31   :  { %v1066_v4 = vpack.c.bf16 %v75_v2, %v71_v1  ;;  %v1068_v7 = vpack.c.bf16 %v74_v5, %v70_v3  ;;  %v77_v8 = vld [vmem:[%s1481_s1 + $0x38] sm:$0xff]  ;;  %v72_v9 = vld [vmem:[%s1481_s1 + $0x10] sm:$0xff]  ;;  %v68_v11 = vld [vmem:[#allocation3] sm:$0xff]  ;;  %vm923_vm4 = vcmask 39936  }
  0x32   :  { %v76_v10 = vld [vmem:[%s1481_s1 + $0x30] sm:$0xff]  ;;  %v1070_v12 = vpack.c.bf16 %v77_v8, %v73_v6  ;;  %v1093_v16 = vld [vmem:[#allocation6 + $0x14] ss:$8 sps:$4 sm:$0xff]   ;;  %v1095_v18 = vld [vmem:[#allocation6 + $0x10] ss:$8 sps:$4 sm:$0xff]  }
  0x33   :  { %1067 = vmatprep.subr.bf16.mxu0 %v1066_v4  ;;  %v1072_v13 = vpack.c.bf16 %v76_v10, %v72_v9  ;;  %v1090_v14 = vld [vmem:[#allocation6 + $0x4] ss:$8 sps:$4 sm:$0xff]   ;;  %v1092_v15 = vld [vmem:[#allocation6] ss:$8 sps:$4 sm:$0xff]   ;;  %v69_v17 = vld [vmem:[#allocation3 + $0x8] sm:$0xff] }
  0x34   :  { %1069 = vmatpush1.bf16.msra.mxu0 %v1068_v7  ;;  %669 = vmatprep.subr.bf16.mxu1 %v1090_v14  ;;  %v1096_v19 = vld [vmem:[#allocation6 + $0x24] ss:$8 sps:$4 sm:$0xff]   ;;  %v1101_v21 = vld [vmem:[#allocation6 + $0x20] ss:$8 sps:$4 sm:$0xff]   ;;  %v1102_v23 = vld [vmem:[#allocation6 + $0x34] ss:$8 sps:$4 sm:$0xff]  }
  0x35   :  { %1071 = vmatprep.subr.bf16.mxu0 %v1070_v12  ;;  %670 = vmatpush1.bf16.msra.mxu1 %v1092_v15  ;;  %v1100_v20 = vld [vmem:[#allocation6 + $0x104] ss:$8 sps:$4 sm:$0xff]   ;;  %v1098_v22 = vld [vmem:[#allocation6 + $0x100] ss:$8 sps:$4 sm:$0xff]   ;;  %v1106_v24 = vld [vmem:[#allocation6 + $0x114] ss:$8 sps:$4 sm:$0xff]  }
  0x36   :  { %671 = vmatprep.subr.bf16.mxu1 %v1093_v16  ;;  %v1107_v25 = vld [vmem:[#allocation6 + $0x30] ss:$8 sps:$4 sm:$0xff]   ;;  %v1108_v27 = vld [vmem:[#allocation6 + $0x44] ss:$8 sps:$4 sm:$0xff]   ;;  %v1110_v29 = vld [vmem:[#allocation6 + $0x120] ss:$8 sps:$4 sm:$0xff]   ;;  %v80_v16 = vlaneseq }
  0x37   :  { %955 = vmatmul.mubr.msk.f32.vlgmr.msra.gmra.mrb[0].mxu0 %vm100_vm0, %v68_v11  ;;  %v1104_v26 = vld [vmem:[#allocation6 + $0x110] ss:$8 sps:$4 sm:$0xff]   ;;  %v1112_v28 = vld [vmem:[#allocation6 + $0x124] ss:$8 sps:$4 sm:$0xff]   ;;  %v1113_v30 = vld [vmem:[#allocation6 + $0x40] ss:$8 sps:$4 sm:$0xff]  }
  0x38   :  { %1073 = vmatpush1.bf16.msra.mxu0 %v1072_v13  ;;  %177 = vmatprep.mubr.f32.mxu0 %v1282_v0  ;;  %v1114_v31 = vld [vmem:[#allocation6 + $0x54] ss:$8 sps:$4 sm:$0xff]   ;;  %v1119_v33 = vld [vmem:[#allocation6 + $0x50] ss:$8 sps:$4 sm:$0xff]   ;;  %v1120_v35 = vld [vmem:[#allocation6 + $0x64] ss:$8 sps:$4 sm:$0xff]  }
  0x39   :  { %712 = vmatprep.subr.bf16.mxu0 %v1100_v20  ;;  %672 = vmatpush1.bf16.msra.mxu1 %v1095_v18  ;;  %v1118_v32 = vld [vmem:[#allocation6 + $0x134] ss:$8 sps:$4 sm:$0xff]   ;;  %v1116_v34 = vld [vmem:[#allocation6 + $0x130] ss:$8 sps:$4 sm:$0xff]   ;;  %v1124_v36 = vld [vmem:[#allocation6 + $0x144] ss:$8 sps:$4 sm:$0xff]  }
  0x3a   :  { %673 = vmatprep.subr.bf16.mxu1 %v1096_v19  ;;  %v1122_v37 = vld [vmem:[#allocation6 + $0x140] ss:$8 sps:$4 sm:$0xff]   ;;  %v1126_v39 = vld [vmem:[#allocation6 + $0x74] ss:$8 sps:$4 sm:$0xff]   ;;  %v1131_v41 = vld [vmem:[#allocation6 + $0x70] ss:$8 sps:$4 sm:$0xff]  }
  0x3b   :  { %956 = vmatmul.mubr.msk.f32.gmra.mrb[2].mxu0 %vm100_vm0, %v69_v17  ;;  %v1125_v38 = vld [vmem:[#allocation6 + $0x60] ss:$8 sps:$4 sm:$0xff]   ;;  %v1130_v40 = vld [vmem:[#allocation6 + $0x154] ss:$8 sps:$4 sm:$0xff]   ;;  %v1128_v42 = vld [vmem:[#allocation6 + $0x150] ss:$8 sps:$4 sm:$0xff]  }
  0x3c   :  { %248 = vmatprep.mubr.f32.mxu0 %v1282_v0  ;;  %v1132_v43 = vld [vmem:[#allocation6 + $0x84] ss:$8 sps:$4 sm:$0xff]   ;;  %v1134_v45 = vld [vmem:[#allocation6 + $0x160] ss:$8 sps:$4 sm:$0xff]   ;;  %v1138_v47 = vld [vmem:[#allocation6 + $0x94] ss:$8 sps:$4 sm:$0xff]  }
  0x3d   :  { %674 = vmatpush1.bf16.msra.mxu1 %v1101_v21  ;;  %v1136_v44 = vld [vmem:[#allocation6 + $0x164] ss:$8 sps:$4 sm:$0xff]   ;;  %v1137_v46 = vld [vmem:[#allocation6 + $0x80] ss:$8 sps:$4 sm:$0xff]   ;;  %v1142_v48 = vld [vmem:[#allocation6 + $0x174] ss:$8 sps:$4 sm:$0xff]  }
  0x3e   :  { %675 = vmatprep.subr.bf16.mxu1 %v1102_v23  ;;  %v1143_v49 = vld [vmem:[#allocation6 + $0x90] ss:$8 sps:$4 sm:$0xff]   ;;  %v1144_v51 = vld [vmem:[#allocation6 + $0xa4] ss:$8 sps:$4 sm:$0xff]   ;;  %v1149_v53 = vld [vmem:[#allocation6 + $0xa0] ss:$8 sps:$4 sm:$0xff]  }
  0x3f   :  { %957 = vmatmul.mubr.msk.f32.vlgmr.msra.gmra.mrb[4].mxu0 %vm100_vm0, %v68_v11  ;;  %v1140_v50 = vld [vmem:[#allocation6 + $0x170] ss:$8 sps:$4 sm:$0xff]   ;;  %v1148_v52 = vld [vmem:[#allocation6 + $0x184] ss:$8 sps:$4 sm:$0xff]   ;;  %v1146_v54 = vld [vmem:[#allocation6 + $0x180] ss:$8 sps:$4 sm:$0xff]  }
  0x40   :  { %254 = vmatprep.mubr.f32.mxu0 %v1282_v0  ;;  %713 = vmatpush1.bf16.msra.mxu0 %v1098_v22  ;;  %v1150_v55 = vld [vmem:[#allocation6 + $0xb4] ss:$8 sps:$4 sm:$0xff]   ;;  %v1155_v57 = vld [vmem:[#allocation6 + $0xb0] ss:$8 sps:$4 sm:$0xff]   ;;  %v1156_v59 = vld [vmem:[#allocation6 + $0xc4] ss:$8 sps:$4 sm:$0xff]  }
  0x41   :  { %714 = vmatprep.subr.bf16.mxu0 %v1106_v24  ;;  %676 = vmatpush1.bf16.msra.mxu1 %v1107_v25  ;;  %v1154_v56 = vld [vmem:[#allocation6 + $0x194] ss:$8 sps:$4 sm:$0xff]   ;;  %v1152_v58 = vld [vmem:[#allocation6 + $0x190] ss:$8 sps:$4 sm:$0xff]   ;;  %v1160_v60 = vld [vmem:[#allocation6 + $0x1a4] ss:$8 sps:$4 sm:$0xff]  }
  0x42   :  { %677 = vmatprep.subr.bf16.mxu1 %v1108_v27  ;;  %v1161_v61 = vld [vmem:[#allocation6 + $0xc0] ss:$8 sps:$4 sm:$0xff]   ;;  %v1162_v63 = vld [vmem:[#allocation6 + $0xd4] ss:$8 sps:$4 sm:$0xff]   ;;  %v1164_v2 = vld [vmem:[#allocation6 + $0x1b0] ss:$8 sps:$4 sm:$0xff]  }
  0x43   :  { %958 = vmatmul.mubr.msk.f32.gmra.mrb[6].mxu0 %vm100_vm0, %v69_v17  ;;  %v1158_v62 = vld [vmem:[#allocation6 + $0x1a0] ss:$8 sps:$4 sm:$0xff]   ;;  %v1166_v1 = vld [vmem:[#allocation6 + $0x1b4] ss:$8 sps:$4 sm:$0xff]   ;;  %v1167_v3 = vld [vmem:[#allocation6 + $0xd0] ss:$8 sps:$4 sm:$0xff]  }
  0x44   :  { %715 = vmatpush1.bf16.msra.mxu0 %v1104_v26  ;;  %v1168_v4 = vld [vmem:[#allocation6 + $0xe4] ss:$8 sps:$4 sm:$0xff]   ;;  %v1170_v6 = vld [vmem:[#allocation6 + $0x1c0] ss:$8 sps:$4 sm:$0xff]   ;;  %v1174_v8 = vld [vmem:[#allocation6 + $0xf4] ss:$8 sps:$4 sm:$0xff]  }
  0x45   :  { %716 = vmatprep.subr.bf16.mxu0 %v1112_v28  ;;  %678 = vmatpush1.bf16.msra.mxu1 %v1113_v30  ;;  %v1172_v5 = vld [vmem:[#allocation6 + $0x1c4] ss:$8 sps:$4 sm:$0xff]   ;;  %v1173_v7 = vld [vmem:[#allocation6 + $0xe0] ss:$8 sps:$4 sm:$0xff]   ;;  %v1178_v9 = vld [vmem:[#allocation6 + $0x1d4] ss:$8 sps:$4 sm:$0xff]  }
  0x46   :  { %679 = vmatprep.subr.bf16.mxu1 %v1114_v31  ;;  %v1176_v10 = vld [vmem:[#allocation6 + $0x1d0] ss:$8 sps:$4 sm:$0xff]   ;;  %v1182_v12 = vld [vmem:[#allocation6 + $0x1e4] ss:$8 sps:$4 sm:$0xff]   ;;  %v1180_v13 = vld [vmem:[#allocation6 + $0x1e0] ss:$8 sps:$4 sm:$0xff]  }
  0x47   :  { %v1179_v11 = vld [vmem:[#allocation6 + $0xf0] ss:$8 sps:$4 sm:$0xff]   ;;  %v1185_v14 = vld [vmem:[#allocation6 + $0x1f4] ss:$8 sps:$4 sm:$0xff]   ;;  %v1401_v17 = vshrl.u32 %v80_v16, 7 }
  0x48   :  { %717 = vmatpush1.bf16.msra.mxu0 %v1110_v29  ;;  %v1183_v15 = vld [vmem:[#allocation6 + $0x1f0] ss:$8 sps:$4 sm:$0xff]  }
  0x49   :  { %718 = vmatprep.subr.bf16.mxu0 %v1118_v32  ;;  %680 = vmatpush1.bf16.msra.mxu1 %v1119_v33  ;;  %v82_v18 = vsub.s32 0, %v1401_v17  ;;  %v78_v19 = vld [vmem:[%s1482_s2] sm:$0xf]  ;;  %v86_v20 = vsub.s32 1, %v1401_v17  ;;  %v90_v26 = vsub.s32 2, %v1401_v17  ;;  %v94_v29 = vsub.s32 3, %v1401_v17 }
  0x4a   :  { %681 = vmatprep.subr.bf16.mxu1 %v1120_v35  ;;  %v1032_v17 = vld [vmem:[%s1487_s7] ss:$0 sm:$0xff]  ;;  %s1285_s2 = smov [#allocation8]  }
  0x4b   :  { %v83_v21 = vrot.slane %v78_v19, %v82_v18  ;;  %v87_v23 = vrot.slane %v78_v19, %v86_v20  ;;  %v91_v35 = vrot.slane %v78_v19, %v90_v26  ;;  %s936_s13 = sshll.u32 %s1285_s2, 4  ;;  %s937_s13 = int_to_ptr.vmem [resolvable:$true] %s936_s13 }
  0x4c   :  { %719 = vmatpush1.bf16.msra.mxu0 %v1116_v34  ;;  %p1253_p7 = scmp.lt.s32.totalorder %s937_s13, %s937_s13 }
  0x4d   :  { %720 = vmatprep.subr.bf16.mxu0 %v1124_v36  ;;  %682 = vmatpush1.bf16.msra.mxu1 %v1125_v38 }
  0x4e   :  { %683 = vmatprep.subr.bf16.mxu1 %v1126_v39  ;;  %v95_v39 = vrot.slane %v78_v19, %v94_v29 }
  0x50   :  { %721 = vmatpush1.bf16.msra.mxu0 %v1122_v37 }
  0x51   :  { %722 = vmatprep.subr.bf16.mxu0 %v1130_v40  ;;  %684 = vmatpush1.bf16.msra.mxu1 %v1131_v41 }
  0x52   :  { %685 = vmatprep.subr.bf16.mxu1 %v1132_v43  ;;  %v1186_v43 = vld [vmem:[%s1485_s5] sm:$0xff]  }
  0x54   :  { %723 = vmatpush1.bf16.msra.mxu0 %v1128_v42 }
  0x55   :  { %724 = vmatprep.subr.bf16.mxu0 %v1136_v44  ;;  %686 = vmatpush1.bf16.msra.mxu1 %v1137_v46 }
  0x56   :  { %687 = vmatprep.subr.bf16.mxu1 %v1138_v47 }
  0x58   :  { %725 = vmatpush1.bf16.msra.mxu0 %v1134_v45 }
  0x59   :  { %726 = vmatprep.subr.bf16.mxu0 %v1142_v48  ;;  %688 = vmatpush1.bf16.msra.mxu1 %v1143_v49 }
  0x5a   :  { %689 = vmatprep.subr.bf16.mxu1 %v1144_v51 }
  0x5c   :  { %727 = vmatpush1.bf16.msra.mxu0 %v1140_v50  ;;  %v1187_v50 = vld [vmem:[%s1485_s5 + $0x8] sm:$0xff]  }
  0x5d   :  { %728 = vmatprep.subr.bf16.mxu0 %v1148_v52  ;;  %690 = vmatpush1.bf16.msra.mxu1 %v1149_v53 }
  0x5e   :  { %691 = vmatprep.subr.bf16.mxu1 %v1150_v55 }
  0x60   :  { %729 = vmatpush1.bf16.msra.mxu0 %v1146_v54 }
  0x61   :  { %730 = vmatprep.subr.bf16.mxu0 %v1154_v56  ;;  %692 = vmatpush1.bf16.msra.mxu1 %v1155_v57  ;;  %v1188_v57 = vld [vmem:[%s1485_s5 + $0x10] sm:$0xff]  }
  0x62   :  { %693 = vmatprep.subr.bf16.mxu1 %v1156_v59  ;;  %v1190_v59 = vld [vmem:[%s1485_s5 + $0x20] sm:$0xff]  }
  0x64   :  { %731 = vmatpush1.bf16.msra.mxu0 %v1152_v58  ;;  %v1189_v58 = vld [vmem:[%s1485_s5 + $0x18] sm:$0xff]  }
  0x65   :  { %732 = vmatprep.subr.bf16.mxu0 %v1160_v60  ;;  %694 = vmatpush1.bf16.msra.mxu1 %v1161_v61  ;;  %v1191_v60 = vld [vmem:[%s1485_s5 + $0x28] sm:$0xff]   ;;  %v1192_v61 = vld [vmem:[%s1485_s5 + $0x30] sm:$0xff]  }
  0x66   :  { %695 = vmatprep.subr.bf16.mxu1 %v1162_v63  ;;  %v337_v63 = vld [vmem:[%s1484_s4] sm:$0x3] }
  0x68   :  { %733 = vmatpush1.bf16.msra.mxu0 %v1158_v62  ;;  %v1193_v62 = vld [vmem:[%s1485_s5 + $0x38] sm:$0xff]  }
  0x69   :  { %734 = vmatprep.subr.bf16.mxu0 %v1166_v1  ;;  %696 = vmatpush1.bf16.msra.mxu1 %v1167_v3  ;;  %v346_v3 = vrot.slane %v337_v63, %v86_v20 }
  0x6a   :  { %697 = vmatprep.subr.bf16.mxu1 %v1168_v4 }
  0x6c   :  { %735 = vmatpush1.bf16.msra.mxu0 %v1164_v2 }
  0x6d   :  { %736 = vmatprep.subr.bf16.mxu0 %v1172_v5  ;;  %698 = vmatpush1.bf16.msra.mxu1 %v1173_v7  ;;  %v342_v5 = vrot.slane %v337_v63, %v82_v18 }
  0x6e   :  { %699 = vmatprep.subr.bf16.mxu1 %v1174_v8 }
  0x70   :  { %737 = vmatpush1.bf16.msra.mxu0 %v1170_v6 }
  0x71   :  { %738 = vmatprep.subr.bf16.mxu0 %v1178_v9  ;;  %700 = vmatpush1.bf16.msra.mxu1 %v1179_v11 }
  0x72   :  { %1046 = vmatprep.subr.bf16.mxu1 %v1282_v0 }
  0x74   :  { %739 = vmatpush1.bf16.msra.mxu0 %v1176_v10 }
  0x75   :  { %740 = vmatprep.subr.bf16.mxu0 %v1182_v12 }
  0x78   :  { %741 = vmatpush1.bf16.msra.mxu0 %v1180_v13 }
  0x79   :  { %742 = vmatprep.subr.bf16.mxu0 %v1185_v14 }
  0x7c   :  { %743 = vmatpush1.bf16.msra.mxu0 %v1183_v15 }
 0x10a   :  { %v173_v22 = vpop.f32.mrb[0].mxu0 }
 0x10b   :  { %v175_v24 = vpop.f32.mrb[1].mxu0  ;;  %v174_v25 = vadd.f32 %v173_v22, %v83_v21 }
 0x10c   :  { %v176_v27 = vadd.f32 %v175_v24, %v87_v23  ;;  %v1023_v24 = vld [vmem:[%s1486_s6] ss:$0 sm:$0xff]  ;;  %s1284_s6 = smov 1  }
 0x10d   :  { %v261_v33 = vmax.f32 %v174_v25, 0.0 }
 0x10e   :  { %v179_v28 = vpop.f32.mrb[2].mxu0  ;;  %v262_v36 = vmax.f32 %v176_v27, 0.0 }
 0x10f   :  { %v180_v30 = vadd.f32 %v179_v28, %v83_v21  ;;  %v181_v31 = vpop.f32.mrb[3].mxu0 }
 0x110   :  { %v182_v32 = vadd.f32 %v181_v31, %v87_v23 }
 0x111   :  { %v265_v34 = vmax.f32 %v180_v30, 0.0 }
 0x112   :  { %v266_v37 = vmax.f32 %v182_v32, 0.0  ;;  %v250_v38 = vpop.f32.mrb[4].mxu0 }
 0x113   :  { %v269_v40 = vpack.c.bf16 %v265_v34, %v261_v33  ;;  %v252_v41 = vpop.f32.mrb[5].mxu0  ;;  %v251_v44 = vadd.f32 %v250_v38, %v91_v35 }
 0x114   :  { %v270_v42 = vpack.c.bf16 %v266_v37, %v262_v36  ;;  %v253_v45 = vadd.f32 %v252_v41, %v95_v39 }
 0x115   :  { %v263_v51 = vmax.f32 %v251_v44, 0.0 }
 0x116   :  { %v256_v46 = vpop.f32.mrb[6].mxu0  ;;  %701 = vmatprep.mubr.bf16.mxu1 %v270_v42  ;;  %v264_v53 = vmax.f32 %v253_v45, 0.0 }
 0x117   :  { %v257_v47 = vadd.f32 %v256_v46, %v91_v35  ;;  %v258_v48 = vpop.f32.mrb[7].mxu0  ;;  %702 = vmatmul.mubr.bf16.vlgmr.msra.gmra.mrb[0].mxu1 %v269_v40 }
 0x118   :  { %v259_v49 = vadd.f32 %v258_v48, %v95_v39  ;;  %1047 = vmatpush3.bf16.msra.mxu1 %v1186_v43  ;;  %1062 = vmatprep.mubr.msk.bf16.mxu1 %vm1283_vm1, %v1282_v0 }
 0x119   :  { %v267_v52 = vmax.f32 %v257_v47, 0.0  ;;  %1048 = vmatprep.subr.bf16.mxu1 %v1282_v0 }
 0x11a   :  { %v268_v54 = vmax.f32 %v259_v49, 0.0 }
 0x11b   :  { %v271_v55 = vpack.c.bf16 %v267_v52, %v263_v51  ;;  %v909_v51 = vstv %s1488_s8  ;;  %s1248_s8 = scalar_lea.vmem %s937_s13, 256 }
 0x11c   :  { %v272_v56 = vpack.c.bf16 %v268_v54, %v264_v53  ;;  %1049 = vmatpush3.bf16.msra.mxu1 %v1187_v50  ;;  %p1249_p6 = scmp.ne.s32.totalorder %s937_s13, %s1248_s8  ;;  %p1254_p8 = scmp.lt.s32.totalorder %s1248_s8, %s1248_s8 }
 0x11d   :  { %1050 = vmatprep.subr.bf16.mxu1 %v1282_v0 }
 0x11e   :  { %744 = vmatprep.mubr.bf16.mxu0 %v272_v56  ;;  %p1255_p9 = por %p1254_p8, %p1253_p7 }
 0x11f   :  { %745 = vmatmul.mubr.bf16.vlgmr.msra.gmra.mrb[8].mxu0 %v271_v55 }
 0x120   :  { %1051 = vmatpush3.bf16.msra.mxu1 %v1188_v57  ;;  %p1256_p10 = pnand %p1255_p9, %p1249_p6 }
 0x121   :  { %1052 = vmatprep.subr.bf16.mxu1 %v1282_v0 }
 0x124   :  { %1053 = vmatpush3.bf16.msra.mxu1 %v1189_v58 }
 0x125   :  { %1054 = vmatprep.subr.bf16.mxu1 %v1282_v0 }
 0x128   :  { %1055 = vmatpush3.bf16.msra.mxu1 %v1190_v59 }
 0x129   :  { %1056 = vmatprep.subr.bf16.mxu1 %v1282_v0 }
 0x12c   :  { %1057 = vmatpush3.bf16.msra.mxu1 %v1191_v60 }
 0x12d   :  { %1058 = vmatprep.subr.bf16.mxu1 %v1282_v0 }
 0x130   :  { %1059 = vmatpush3.bf16.msra.mxu1 %v1192_v61 }
 0x131   :  { %1060 = vmatprep.subr.bf16.mxu1 %v1282_v0 }
 0x134   :  { %1061 = vmatpush3.bf16.msra.mxu1 %v1193_v62 }
 0x1ea   :  { %v703_v1 = vpop.f32.mrb[0].mxu1 }
 0x1eb   :  { %v705_v2 = vpop.f32.mrb[1].mxu1  ;;  %v704_v8 = vadd.f32 %v703_v1, %v342_v5 }
 0x1ec   :  { %v707_v4 = vpop.f32.mrb[2].mxu1  ;;  %v706_v9 = vadd.f32 %v705_v2, %v346_v3 }
 0x1ed   :  { %v709_v6 = vpop.f32.mrb[3].mxu1  ;;  %v708_v11 = vadd.f32 %v707_v4, %v342_v5 }
 0x1ee   :  { %v710_v7 = vadd.f32 %v709_v6, %v346_v3 }
 0x1f2   :  { %v746_v10 = vpop.f32.mrb[8].mxu0 }
 0x1f3   :  { %v747_v0 = vadd.f32 %v746_v10, %v704_v8  ;;  %v748_v12 = vpop.f32.mrb[9].mxu0 }
 0x1f4   :  { %v749_v13 = vadd.f32 %v748_v12, %v706_v9  ;;  %v750_v14 = vpop.f32.mrb[10].mxu0 }
 0x1f5   :  { %v751_v15 = vadd.f32 %v750_v14, %v708_v11  ;;  %v752_v16 = vpop.f32.mrb[11].mxu0  ;;  %v755_v21 = vmax.f32 %v747_v0, 0.0 }
 0x1f6   :  { %v753_v19 = vadd.f32 %v752_v16, %v710_v7  ;;  %v756_v32 = vmax.f32 %v749_v13, 0.0 }
 0x1f7   :  { %v757_v22 = vmax.f32 %v751_v15, 0.0 }
 0x1f8   :  { %v758_v20 = vmax.f32 %v753_v19, 0.0  ;;  %v902_v34 = vmul.f32 %v1032_v17, %v756_v32 }
 0x1f9   :  { %v759_v23 = vpack.c.bf16 %v757_v22, %v755_v21 }
 0x1fa   :  { %v903_v18 = vmul.f32 %v1032_v17, %v758_v20 }
 0x1fb   :  { %1063 = vmatmul.mubr.bf16.vlgmr.msra.gmra.mrb[4].mxu1 %v759_v23 }
 0x2ce   :  { %v865_v25 = vpop.f32.mrb[4].mxu1 }
 0x2cf   :  { %v866_v26 = vadd.f32 %v1023_v24, %v865_v25  ;;  %v1064_v27 = vpop.f32.mrb[5].mxu1 }
 0x2d0   :  { %v868_v28 = vpop.f32.mrb[6].mxu1 }
 0x2d1   :  { %v869_v29 = vadd.f32 %v1023_v24, %v868_v28  ;;  %v1065_v30 = vpop.f32.mrb[7].mxu1  ;;  %v873_v31 = vsel %vm872_vm2, %v866_v26, -inf }
 0x2d2   :  { %874 = vmax.xlane.f32.xlu0 %v873_v31 }
 0x2d3   :  { %v876_v33 = vsel %vm872_vm2, %v869_v29, -inf }
 0x2d6   :  { %877 = vmax.xlane.f32.xlu0 %v876_v33 }
 0x2da   :  { %904 = vadd.xlane.f32.xlu0 %v902_v34 }
 0x35f   :  { %v875_v35 = vpop.xlane.xlu0 %874 }
 0x360   :  { %v879_v36 = vsub.f32 %v866_v26, %v875_v35 }
 0x362   :  { %v881_v37 = vmul.f32 1.442695, %v879_v36 }
 0x363   :  { %v878_v38 = vpop.xlane.xlu0 %877 }
 0x364   :  { %1194 = vpow2.f32 %v881_v37  ;;  %v880_v39 = vsub.f32 %v869_v29, %v878_v38 }
 0x366   :  { %v883_v40 = vmul.f32 1.442695, %v880_v39 }
 0x367   :  { %v905_v52 = vpop.xlane.xlu0 %904 }
 0x368   :  { %1196 = vpow2.f32 %v883_v40  ;;  %v910_v53 = vadd.f32 %v909_v51, %v905_v52 }
 0x36e   :  { %v1195_v41 = vpop.eup %1194 }
 0x36f   :  { %v885_v42 = vsel %vm872_vm2, %v1195_v41, 0.0 }
 0x370   :  { %886 = vadd.xlane.f32.xlu1 %v885_v42 }
 0x372   :  { %v1197_v43 = vpop.eup %1196 }
 0x373   :  { %v888_v44 = vsel %vm872_vm2, %v1197_v43, 0.0 }
 0x374   :  { %889 = vadd.xlane.f32.xlu1 %v888_v44 }
 0x378   :  { %906 = vadd.xlane.f32.xlu1 %v903_v18 }
 0x3fd   :  { %v887_v45 = vpop.xlane.xlu1 %886 }
 0x3fe   :  { %1198 = vrcp.f32 %v887_v45 }
 0x401   :  { %v890_v46 = vpop.xlane.xlu1 %889 }
 0x402   :  { %1200 = vrcp.f32 %v890_v46 }
 0x405   :  { %v907_v54 = vpop.xlane.xlu1 %906 }
 0x406   :  { %v911_v58 = vadd.f32 %v909_v51, %v907_v54 }
 0x408   :  { %v1199_v47 = vpop.eup %1198 }
 0x409   :  { %v893_v48 = vmul.f32 %v1199_v47, %v1195_v41 }
 0x40b   :  { %914 = vrot.lane.b32.xlu0 %v893_v48, %s1284_s6 }
 0x40c   :  { %v1201_v49 = vpop.eup %1200 }
 0x40d   :  { %v894_v50 = vmul.f32 %v1201_v49, %v1197_v43 }
 0x40f   :  { %916 = vrot.lane.b32.xlu1 %v894_v50, %s1284_s6 }
 0x47d   :  { %v915_v55 = vpop.permute.xlu0 %914 }
 0x47e   :  { %v921_v56 = vsel %vm920_vm3, %v910_v53, %v915_v55 }
 0x47f   :  { %v924_v57 = vsel %vm923_vm4, %v921_v56, 0.0 }
 0x480   :  { %926 = vst [vmem:[#allocation8] sm:$0xff] %v924_v57 }
 0x481   :  { %v917_v59 = vpop.permute.xlu1 %916 }
 0x482   :  { %v922_v60 = vsel %vm920_vm3, %v911_v58, %v917_v59 }
 0x483   :  { %v925_v61 = vsel %vm923_vm4, %v922_v60, 0.0 }
 0x484   :  { %927 = vst [vmem:[#allocation8 + $0x8] sm:$0xff] %v925_v61 }
 0x485   :  { %1259 = shalt.err (!%p1256_p10)
}
 0x486   :  { %s1260_s19 = scalar_lea.hbm %s935_s18, 256  ;;  %s1262_s30 = scalar_lea.hbm %s1489_s9, 256 }
 0x487   :  { %p1261_p11 = scmp.ne.s32.totalorder %s935_s18, %s1260_s19  ;;  %p1263_p12 = scmp.lt.u32.totalorder %s935_s18, %s1489_s9 }
 0x488   :  { %p1264_p13 = scmp.lt.u32.totalorder %s1262_s30, %s1260_s19  ;;  %p1266_p1 = scmp.lt.u32.totalorder %s1260_s19, %s935_s18 }
 0x48a   :  { %p1265_p0 = por %p1264_p13, %p1263_p12 }
 0x48c   :  { %p1267_p2 = por %p1266_p1, %p1265_p0 }
 0x48e   :  { %p1268_p3 = pnand %p1267_p2, %p1261_p11 }
 0x490   :  { %1271 = shalt.err (!%p1268_p3)
}
 0x491   :  { %942 = dma.vmem_to_hbm [thread:$0]  %s937_s13, 256, %s935_s18, [#allocation5], %s1279_s23, %s1279_s23, %s1280_s24  }
 0x492   :  { %1276 = dma.done.wait [#allocation5], 256  }
 0x493   :  { %1277 = vsyncadd [#allocation5], 4294967040 }
 0x494   :  { %946 = vsyncpa [#allocation4], 1 }
 0x495   :  { %947 = vsyncpa [#allocation7], 1 }
 0x496   :  { %948 = vsyncpa [#allocation5], 1 }

// kernel: tpu_custom_call.1
= control target key start
LH: loop header
LB: loop body
LE: loop exit
PB: predicated region body
PF: predicated region fallthrough
CT: control target
= control target key end

     0   :  { %15 = vsyncpa [#allocation4], 0  ;;  %s1457_s0 = inlined_call_operand.hbm [shape: f32[16,16], index: 0, kind: input, shape index: {}]   ;;  %s1458_s1 = inlined_call_operand.vmem [shape: f32[16,512], index: 1, kind: input, shape index: {}]   ;;  %s1459_s2 = inlined_call_operand.vmem [shape: f32[1,512], index: 2, kind: input, shape index: {}]   ;;  %s1460_s3 = inlined_call_operand.hbm [shape: bf16[512,256], index: 3, kind: input, shape index: {}]   ;;  %s1461_s4 = inlined_call_operand.vmem [shape: f32[1,256], index: 4, kind: input, shape index: {}]   ;;  %s1462_s5 = inlined_call_operand.vmem [shape: bf16[128,4], index: 5, kind: input, shape index: {}]   ;;  %s1463_s6 = inlined_call_operand.vmem [shape: f32[1,4], index: 6, kind: input, shape index: {}]   ;;  %s1464_s7 = inlined_call_operand.vmem [shape: f32[1,128], index: 7, kind: input, shape index: {}]   ;;  %s1465_s8 = inlined_call_operand.<no memory space> [shape: f32[1,1], index: 8, kind: input, shape index: {}]   ;;  %s1466_s9 = inlined_call_operand.hbm [shape: f32[16,128], index: 9, kind: output, shape index: {}]  }
   0x1   :  { %16 = vsyncpa [#allocation7], 0 }
   0x2   :  { %17 = vsyncpa [#allocation5], 0  ;;  %s1256_s30 = smov [#allocation3]   ;;  %s1184_s13 = scalar_lea.hbm %s1457_s0, 256 }
   0x3   :  { %s23_s10 = sshll.u32 %s1256_s30, 4  ;;  %p1185_p0 = scmp.ne.s32.totalorder %s1457_s0, %s1184_s13  ;;  %s24_s10 = int_to_ptr.vmem [resolvable:$true] %s23_s10 }
   0x4   :  { %p1188_p1 = scmp.lt.u32.totalorder %s1184_s13, %s1457_s0 }
   0x6   :  { %p1190_p2 = pnand %p1188_p1, %p1185_p0 }
   0x8   :  { %1193 = shalt.err (!%p1190_p2)
}
   0x9   :  { %s1194_s18 = scalar_lea.vmem %s24_s10, 256  ;;  %p1199_p4 = scmp.lt.s32.totalorder %s24_s10, %s24_s10 }
   0xa   :  { %p1195_p3 = scmp.ne.s32.totalorder %s24_s10, %s1194_s18  ;;  %p1200_p5 = scmp.lt.s32.totalorder %s1194_s18, %s1194_s18 }
   0xc   :  { %p1201_p6 = por %p1200_p5, %p1199_p4 }
   0xe   :  { %p1202_p7 = pnand %p1201_p6, %p1195_p3 }
  0x10   :  { %1205 = shalt.err (!%p1202_p7)
}
  0x11   :  { %s1257_s19 = smov 128   ;;  %s1258_s20 = smov 8  }
  0x12   :  { %29 = dma.hbm_to_vmem [thread:$0]  %s1457_s0, 256, %s24_s10, [#allocation4], %s1257_s19, %s1257_s19, %s1258_s20  }
  0x13   :  { %s1259_s23 = smov [#allocation6]   ;;  %s1206_s27 = scalar_lea.hbm %s1460_s3, 8192 }
  0x14   :  { %s39_s24 = sshll.u32 %s1259_s23, 4  ;;  %p1207_p8 = scmp.ne.s32.totalorder %s1460_s3, %s1206_s27  ;;  %s40_s24 = int_to_ptr.vmem [resolvable:$true] %s39_s24 }
  0x15   :  { %p1210_p9 = scmp.lt.u32.totalorder %s1206_s27, %s1460_s3 }
  0x17   :  { %p1212_p10 = pnand %p1210_p9, %p1207_p8 }
  0x19   :  { %1215 = shalt.err (!%p1212_p10)
}
  0x1a   :  { %s1216_s12 = scalar_lea.vmem %s40_s24, 8192  ;;  %p1221_p12 = scmp.lt.s32.totalorder %s40_s24, %s40_s24 }
  0x1b   :  { %p1217_p11 = scmp.ne.s32.totalorder %s40_s24, %s1216_s12  ;;  %p1222_p13 = scmp.lt.s32.totalorder %s1216_s12, %s1216_s12 }
  0x1d   :  { %p1223_p0 = por %p1222_p13, %p1221_p12 }
  0x1f   :  { %p1224_p1 = pnand %p1223_p0, %p1217_p11 }
  0x21   :  { %1227 = shalt.err (!%p1224_p1)
}
  0x22   :  { %45 = dma.hbm_to_vmem [thread:$0]  %s1460_s3, 8192, %s40_s24, [#allocation7], %s1257_s19, %s1257_s19, %s1258_s20  }
  0x23   :  { %1250 = dma.done.wait [#allocation4], 256  }
  0x24   :  { %1251 = vsyncadd [#allocation4], 4294967040 }
  0x25   :  { %1252 = dma.done.wait [#allocation7], 8192  }
  0x26   :  { %1253 = vsyncadd [#allocation7], 4294959104  ;;  %v1260_v0 = vmov 0.0   ;;  %v66_v1 = vld [vmem:[%s1458_s1 + $0x8] sm:$0xff]  ;;  %v65_v3 = vld [vmem:[%s1458_s1] sm:$0xff]  ;;  %vm95_vm0 = vcmask 130048  }
  0x27   :  { %166 = vmatprep.mubr.f32.mxu0 %v1260_v0  ;;  %v70_v2 = vld [vmem:[%s1458_s1 + $0x28] sm:$0xff]  ;;  %v69_v5 = vld [vmem:[%s1458_s1 + $0x20] sm:$0xff]  ;;  %v68_v6 = vld [vmem:[%s1458_s1 + $0x18] sm:$0xff]  ;;  %vm1261_vm1 = vmmov 0   ;;  %vm867_vm2 = vcmask 31744   ;;  %vm915_vm3 = vcmask 7168  }
  0x28   :  { %v1048_v4 = vpack.c.bf16 %v70_v2, %v66_v1  ;;  %v1050_v7 = vpack.c.bf16 %v69_v5, %v65_v3  ;;  %v72_v8 = vld [vmem:[%s1458_s1 + $0x38] sm:$0xff]  ;;  %v67_v9 = vld [vmem:[%s1458_s1 + $0x10] sm:$0xff]  ;;  %v63_v11 = vld [vmem:[#allocation3] sm:$0xff]  ;;  %vm918_vm4 = vcmask 39936  }
  0x29   :  { %v71_v10 = vld [vmem:[%s1458_s1 + $0x30] sm:$0xff]  ;;  %v1052_v12 = vpack.c.bf16 %v72_v8, %v68_v6  ;;  %v1075_v16 = vld [vmem:[#allocation6 + $0x14] ss:$8 sps:$4 sm:$0xff]   ;;  %v1077_v18 = vld [vmem:[#allocation6 + $0x10] ss:$8 sps:$4 sm:$0xff]   ;;  %s1263_s1 = smov [#allocation8]  }
  0x2a   :  { %1049 = vmatprep.subr.bf16.mxu0 %v1048_v4  ;;  %v1054_v13 = vpack.c.bf16 %v71_v10, %v67_v9  ;;  %v1072_v14 = vld [vmem:[#allocation6 + $0x4] ss:$8 sps:$4 sm:$0xff]   ;;  %v1074_v15 = vld [vmem:[#allocation6] ss:$8 sps:$4 sm:$0xff]   ;;  %v64_v17 = vld [vmem:[#allocation3 + $0x8] sm:$0xff]  ;;  %s928_s30 = sshll.u32 %s1263_s1, 4  ;;  %s929_s30 = int_to_ptr.vmem [resolvable:$true] %s928_s30 }
  0x2b   :  { %1051 = vmatpush1.bf16.msra.mxu0 %v1050_v7  ;;  %664 = vmatprep.subr.bf16.mxu1 %v1072_v14  ;;  %v1078_v19 = vld [vmem:[#allocation6 + $0x24] ss:$8 sps:$4 sm:$0xff]   ;;  %v1083_v21 = vld [vmem:[#allocation6 + $0x20] ss:$8 sps:$4 sm:$0xff]   ;;  %v1084_v23 = vld [vmem:[#allocation6 + $0x34] ss:$8 sps:$4 sm:$0xff]   ;;  %p1233_p3 = scmp.lt.s32.totalorder %s929_s30, %s929_s30 }
  0x2c   :  { %1053 = vmatprep.subr.bf16.mxu0 %v1052_v12  ;;  %665 = vmatpush1.bf16.msra.mxu1 %v1074_v15  ;;  %v1082_v20 = vld [vmem:[#allocation6 + $0x104] ss:$8 sps:$4 sm:$0xff]   ;;  %v1080_v22 = vld [vmem:[#allocation6 + $0x100] ss:$8 sps:$4 sm:$0xff]   ;;  %v1088_v24 = vld [vmem:[#allocation6 + $0x114] ss:$8 sps:$4 sm:$0xff]  }
  0x2d   :  { %666 = vmatprep.subr.bf16.mxu1 %v1075_v16  ;;  %v1089_v25 = vld [vmem:[#allocation6 + $0x30] ss:$8 sps:$4 sm:$0xff]   ;;  %v1090_v27 = vld [vmem:[#allocation6 + $0x44] ss:$8 sps:$4 sm:$0xff]   ;;  %v1092_v29 = vld [vmem:[#allocation6 + $0x120] ss:$8 sps:$4 sm:$0xff]   ;;  %v75_v16 = vlaneseq }
  0x2e   :  { %941 = vmatmul.mubr.msk.f32.vlgmr.msra.gmra.mrb[0].mxu0 %vm95_vm0, %v63_v11  ;;  %v1086_v26 = vld [vmem:[#allocation6 + $0x110] ss:$8 sps:$4 sm:$0xff]   ;;  %v1094_v28 = vld [vmem:[#allocation6 + $0x124] ss:$8 sps:$4 sm:$0xff]   ;;  %v1095_v30 = vld [vmem:[#allocation6 + $0x40] ss:$8 sps:$4 sm:$0xff]  }
  0x2f   :  { %1055 = vmatpush1.bf16.msra.mxu0 %v1054_v13  ;;  %172 = vmatprep.mubr.f32.mxu0 %v1260_v0  ;;  %v1096_v31 = vld [vmem:[#allocation6 + $0x54] ss:$8 sps:$4 sm:$0xff]   ;;  %v1101_v33 = vld [vmem:[#allocation6 + $0x50] ss:$8 sps:$4 sm:$0xff]   ;;  %v1102_v35 = vld [vmem:[#allocation6 + $0x64] ss:$8 sps:$4 sm:$0xff]  }
  0x30   :  { %707 = vmatprep.subr.bf16.mxu0 %v1082_v20  ;;  %667 = vmatpush1.bf16.msra.mxu1 %v1077_v18  ;;  %v1100_v32 = vld [vmem:[#allocation6 + $0x134] ss:$8 sps:$4 sm:$0xff]   ;;  %v1098_v34 = vld [vmem:[#allocation6 + $0x130] ss:$8 sps:$4 sm:$0xff]   ;;  %v1106_v36 = vld [vmem:[#allocation6 + $0x144] ss:$8 sps:$4 sm:$0xff]  }
  0x31   :  { %668 = vmatprep.subr.bf16.mxu1 %v1078_v19  ;;  %v1104_v37 = vld [vmem:[#allocation6 + $0x140] ss:$8 sps:$4 sm:$0xff]   ;;  %v1108_v39 = vld [vmem:[#allocation6 + $0x74] ss:$8 sps:$4 sm:$0xff]   ;;  %v1113_v41 = vld [vmem:[#allocation6 + $0x70] ss:$8 sps:$4 sm:$0xff]  }
  0x32   :  { %942 = vmatmul.mubr.msk.f32.gmra.mrb[2].mxu0 %vm95_vm0, %v64_v17  ;;  %v1107_v38 = vld [vmem:[#allocation6 + $0x60] ss:$8 sps:$4 sm:$0xff]   ;;  %v1112_v40 = vld [vmem:[#allocation6 + $0x154] ss:$8 sps:$4 sm:$0xff]   ;;  %v1110_v42 = vld [vmem:[#allocation6 + $0x150] ss:$8 sps:$4 sm:$0xff]  }
  0x33   :  { %243 = vmatprep.mubr.f32.mxu0 %v1260_v0  ;;  %v1114_v43 = vld [vmem:[#allocation6 + $0x84] ss:$8 sps:$4 sm:$0xff]   ;;  %v1116_v45 = vld [vmem:[#allocation6 + $0x160] ss:$8 sps:$4 sm:$0xff]   ;;  %v1120_v47 = vld [vmem:[#allocation6 + $0x94] ss:$8 sps:$4 sm:$0xff]  }
  0x34   :  { %669 = vmatpush1.bf16.msra.mxu1 %v1083_v21  ;;  %v1118_v44 = vld [vmem:[#allocation6 + $0x164] ss:$8 sps:$4 sm:$0xff]   ;;  %v1119_v46 = vld [vmem:[#allocation6 + $0x80] ss:$8 sps:$4 sm:$0xff]   ;;  %v1124_v48 = vld [vmem:[#allocation6 + $0x174] ss:$8 sps:$4 sm:$0xff]  }
  0x35   :  { %670 = vmatprep.subr.bf16.mxu1 %v1084_v23  ;;  %v1125_v49 = vld [vmem:[#allocation6 + $0x90] ss:$8 sps:$4 sm:$0xff]   ;;  %v1126_v51 = vld [vmem:[#allocation6 + $0xa4] ss:$8 sps:$4 sm:$0xff]   ;;  %v1131_v53 = vld [vmem:[#allocation6 + $0xa0] ss:$8 sps:$4 sm:$0xff]  }
  0x36   :  { %943 = vmatmul.mubr.msk.f32.vlgmr.msra.gmra.mrb[4].mxu0 %vm95_vm0, %v63_v11  ;;  %v1122_v50 = vld [vmem:[#allocation6 + $0x170] ss:$8 sps:$4 sm:$0xff]   ;;  %v1130_v52 = vld [vmem:[#allocation6 + $0x184] ss:$8 sps:$4 sm:$0xff]   ;;  %v1128_v54 = vld [vmem:[#allocation6 + $0x180] ss:$8 sps:$4 sm:$0xff]  }
  0x37   :  { %249 = vmatprep.mubr.f32.mxu0 %v1260_v0  ;;  %708 = vmatpush1.bf16.msra.mxu0 %v1080_v22  ;;  %v1132_v55 = vld [vmem:[#allocation6 + $0xb4] ss:$8 sps:$4 sm:$0xff]   ;;  %v1137_v57 = vld [vmem:[#allocation6 + $0xb0] ss:$8 sps:$4 sm:$0xff]   ;;  %v1138_v59 = vld [vmem:[#allocation6 + $0xc4] ss:$8 sps:$4 sm:$0xff]  }
  0x38   :  { %709 = vmatprep.subr.bf16.mxu0 %v1088_v24  ;;  %671 = vmatpush1.bf16.msra.mxu1 %v1089_v25  ;;  %v1136_v56 = vld [vmem:[#allocation6 + $0x194] ss:$8 sps:$4 sm:$0xff]   ;;  %v1134_v58 = vld [vmem:[#allocation6 + $0x190] ss:$8 sps:$4 sm:$0xff]   ;;  %v1142_v60 = vld [vmem:[#allocation6 + $0x1a4] ss:$8 sps:$4 sm:$0xff]  }
  0x39   :  { %672 = vmatprep.subr.bf16.mxu1 %v1090_v27  ;;  %v1143_v61 = vld [vmem:[#allocation6 + $0xc0] ss:$8 sps:$4 sm:$0xff]   ;;  %v1144_v63 = vld [vmem:[#allocation6 + $0xd4] ss:$8 sps:$4 sm:$0xff]   ;;  %v1146_v2 = vld [vmem:[#allocation6 + $0x1b0] ss:$8 sps:$4 sm:$0xff]  }
  0x3a   :  { %944 = vmatmul.mubr.msk.f32.gmra.mrb[6].mxu0 %vm95_vm0, %v64_v17  ;;  %v1140_v62 = vld [vmem:[#allocation6 + $0x1a0] ss:$8 sps:$4 sm:$0xff]   ;;  %v1148_v1 = vld [vmem:[#allocation6 + $0x1b4] ss:$8 sps:$4 sm:$0xff]   ;;  %v1149_v3 = vld [vmem:[#allocation6 + $0xd0] ss:$8 sps:$4 sm:$0xff]  }
  0x3b   :  { %710 = vmatpush1.bf16.msra.mxu0 %v1086_v26  ;;  %v1150_v4 = vld [vmem:[#allocation6 + $0xe4] ss:$8 sps:$4 sm:$0xff]   ;;  %v1152_v6 = vld [vmem:[#allocation6 + $0x1c0] ss:$8 sps:$4 sm:$0xff]   ;;  %v1156_v8 = vld [vmem:[#allocation6 + $0xf4] ss:$8 sps:$4 sm:$0xff]  }
  0x3c   :  { %711 = vmatprep.subr.bf16.mxu0 %v1094_v28  ;;  %673 = vmatpush1.bf16.msra.mxu1 %v1095_v30  ;;  %v1154_v5 = vld [vmem:[#allocation6 + $0x1c4] ss:$8 sps:$4 sm:$0xff]   ;;  %v1155_v7 = vld [vmem:[#allocation6 + $0xe0] ss:$8 sps:$4 sm:$0xff]   ;;  %v1160_v9 = vld [vmem:[#allocation6 + $0x1d4] ss:$8 sps:$4 sm:$0xff]  }
  0x3d   :  { %674 = vmatprep.subr.bf16.mxu1 %v1096_v31  ;;  %v1158_v10 = vld [vmem:[#allocation6 + $0x1d0] ss:$8 sps:$4 sm:$0xff]   ;;  %v1164_v12 = vld [vmem:[#allocation6 + $0x1e4] ss:$8 sps:$4 sm:$0xff]   ;;  %v1162_v13 = vld [vmem:[#allocation6 + $0x1e0] ss:$8 sps:$4 sm:$0xff]  }
  0x3e   :  { %v1161_v11 = vld [vmem:[#allocation6 + $0xf0] ss:$8 sps:$4 sm:$0xff]   ;;  %v1167_v14 = vld [vmem:[#allocation6 + $0x1f4] ss:$8 sps:$4 sm:$0xff]   ;;  %v1377_v17 = vshrl.u32 %v75_v16, 7 }
  0x3f   :  { %712 = vmatpush1.bf16.msra.mxu0 %v1092_v29  ;;  %v1165_v15 = vld [vmem:[#allocation6 + $0x1f0] ss:$8 sps:$4 sm:$0xff]  }
  0x40   :  { %713 = vmatprep.subr.bf16.mxu0 %v1100_v32  ;;  %675 = vmatpush1.bf16.msra.mxu1 %v1101_v33  ;;  %v77_v18 = vsub.s32 0, %v1377_v17  ;;  %v73_v19 = vld [vmem:[%s1459_s2] sm:$0xf]  ;;  %v81_v20 = vsub.s32 1, %v1377_v17  ;;  %v85_v26 = vsub.s32 2, %v1377_v17  ;;  %v89_v29 = vsub.s32 3, %v1377_v17 }
  0x41   :  { %676 = vmatprep.subr.bf16.mxu1 %v1102_v35  ;;  %v1018_v17 = vld [vmem:[%s1464_s7] ss:$0 sm:$0xff]  ;;  %s1228_s2 = scalar_lea.vmem %s929_s30, 256 }
  0x42   :  { %v78_v21 = vrot.slane %v73_v19, %v77_v18  ;;  %v82_v23 = vrot.slane %v73_v19, %v81_v20  ;;  %v86_v35 = vrot.slane %v73_v19, %v85_v26  ;;  %p1229_p2 = scmp.ne.s32.totalorder %s929_s30, %s1228_s2  ;;  %p1234_p4 = scmp.lt.s32.totalorder %s1228_s2, %s1228_s2 }
  0x43   :  { %714 = vmatpush1.bf16.msra.mxu0 %v1098_v34 }
  0x44   :  { %715 = vmatprep.subr.bf16.mxu0 %v1106_v36  ;;  %677 = vmatpush1.bf16.msra.mxu1 %v1107_v38  ;;  %p1235_p5 = por %p1234_p4, %p1233_p3 }
  0x45   :  { %678 = vmatprep.subr.bf16.mxu1 %v1108_v39  ;;  %v90_v39 = vrot.slane %v73_v19, %v89_v29 }
  0x46   :  { %p1236_p6 = pnand %p1235_p5, %p1229_p2 }
  0x47   :  { %716 = vmatpush1.bf16.msra.mxu0 %v1104_v37 }
  0x48   :  { %717 = vmatprep.subr.bf16.mxu0 %v1112_v40  ;;  %679 = vmatpush1.bf16.msra.mxu1 %v1113_v41 }
  0x49   :  { %680 = vmatprep.subr.bf16.mxu1 %v1114_v43  ;;  %v1168_v43 = vld [vmem:[%s1462_s5] sm:$0xff]  }
  0x4b   :  { %718 = vmatpush1.bf16.msra.mxu0 %v1110_v42 }
  0x4c   :  { %719 = vmatprep.subr.bf16.mxu0 %v1118_v44  ;;  %681 = vmatpush1.bf16.msra.mxu1 %v1119_v46 }
  0x4d   :  { %682 = vmatprep.subr.bf16.mxu1 %v1120_v47 }
  0x4f   :  { %720 = vmatpush1.bf16.msra.mxu0 %v1116_v45 }
  0x50   :  { %721 = vmatprep.subr.bf16.mxu0 %v1124_v48  ;;  %683 = vmatpush1.bf16.msra.mxu1 %v1125_v49 }
  0x51   :  { %684 = vmatprep.subr.bf16.mxu1 %v1126_v51 }
  0x53   :  { %722 = vmatpush1.bf16.msra.mxu0 %v1122_v50  ;;  %v1169_v50 = vld [vmem:[%s1462_s5 + $0x8] sm:$0xff]  }
  0x54   :  { %723 = vmatprep.subr.bf16.mxu0 %v1130_v52  ;;  %685 = vmatpush1.bf16.msra.mxu1 %v1131_v53 }
  0x55   :  { %686 = vmatprep.subr.bf16.mxu1 %v1132_v55 }
  0x57   :  { %724 = vmatpush1.bf16.msra.mxu0 %v1128_v54 }
  0x58   :  { %725 = vmatprep.subr.bf16.mxu0 %v1136_v56  ;;  %687 = vmatpush1.bf16.msra.mxu1 %v1137_v57  ;;  %v1170_v57 = vld [vmem:[%s1462_s5 + $0x10] sm:$0xff]  }
  0x59   :  { %688 = vmatprep.subr.bf16.mxu1 %v1138_v59  ;;  %v1172_v59 = vld [vmem:[%s1462_s5 + $0x20] sm:$0xff]  }
  0x5b   :  { %726 = vmatpush1.bf16.msra.mxu0 %v1134_v58  ;;  %v1171_v58 = vld [vmem:[%s1462_s5 + $0x18] sm:$0xff]  }
  0x5c   :  { %727 = vmatprep.subr.bf16.mxu0 %v1142_v60  ;;  %689 = vmatpush1.bf16.msra.mxu1 %v1143_v61  ;;  %v1173_v60 = vld [vmem:[%s1462_s5 + $0x28] sm:$0xff]   ;;  %v1174_v61 = vld [vmem:[%s1462_s5 + $0x30] sm:$0xff]  }
  0x5d   :  { %690 = vmatprep.subr.bf16.mxu1 %v1144_v63  ;;  %v332_v63 = vld [vmem:[%s1461_s4] sm:$0x3] }
  0x5f   :  { %728 = vmatpush1.bf16.msra.mxu0 %v1140_v62  ;;  %v1175_v62 = vld [vmem:[%s1462_s5 + $0x38] sm:$0xff]  }
  0x60   :  { %729 = vmatprep.subr.bf16.mxu0 %v1148_v1  ;;  %691 = vmatpush1.bf16.msra.mxu1 %v1149_v3  ;;  %v341_v3 = vrot.slane %v332_v63, %v81_v20 }
  0x61   :  { %692 = vmatprep.subr.bf16.mxu1 %v1150_v4 }
  0x63   :  { %730 = vmatpush1.bf16.msra.mxu0 %v1146_v2 }
  0x64   :  { %731 = vmatprep.subr.bf16.mxu0 %v1154_v5  ;;  %693 = vmatpush1.bf16.msra.mxu1 %v1155_v7  ;;  %v337_v5 = vrot.slane %v332_v63, %v77_v18 }
  0x65   :  { %694 = vmatprep.subr.bf16.mxu1 %v1156_v8 }
  0x67   :  { %732 = vmatpush1.bf16.msra.mxu0 %v1152_v6 }
  0x68   :  { %733 = vmatprep.subr.bf16.mxu0 %v1160_v9  ;;  %695 = vmatpush1.bf16.msra.mxu1 %v1161_v11 }
  0x69   :  { %1028 = vmatprep.subr.bf16.mxu1 %v1260_v0 }
  0x6b   :  { %734 = vmatpush1.bf16.msra.mxu0 %v1158_v10 }
  0x6c   :  { %735 = vmatprep.subr.bf16.mxu0 %v1164_v12 }
  0x6f   :  { %736 = vmatpush1.bf16.msra.mxu0 %v1162_v13 }
  0x70   :  { %737 = vmatprep.subr.bf16.mxu0 %v1167_v14 }
  0x73   :  { %738 = vmatpush1.bf16.msra.mxu0 %v1165_v15 }
 0x101   :  { %v168_v22 = vpop.f32.mrb[0].mxu0 }
 0x102   :  { %v170_v24 = vpop.f32.mrb[1].mxu0  ;;  %v169_v25 = vadd.f32 %v168_v22, %v78_v21 }
 0x103   :  { %v171_v27 = vadd.f32 %v170_v24, %v82_v23  ;;  %v1009_v24 = vld [vmem:[%s1463_s6] ss:$0 sm:$0xff]  ;;  %s1262_s6 = smov 1  }
 0x104   :  { %v256_v33 = vmax.f32 %v169_v25, 0.0 }
 0x105   :  { %v174_v28 = vpop.f32.mrb[2].mxu0  ;;  %v257_v36 = vmax.f32 %v171_v27, 0.0 }
 0x106   :  { %v175_v30 = vadd.f32 %v174_v28, %v78_v21  ;;  %v176_v31 = vpop.f32.mrb[3].mxu0 }
 0x107   :  { %v177_v32 = vadd.f32 %v176_v31, %v82_v23 }
 0x108   :  { %v260_v34 = vmax.f32 %v175_v30, 0.0 }
 0x109   :  { %v261_v37 = vmax.f32 %v177_v32, 0.0  ;;  %v245_v38 = vpop.f32.mrb[4].mxu0 }
 0x10a   :  { %v264_v40 = vpack.c.bf16 %v260_v34, %v256_v33  ;;  %v247_v41 = vpop.f32.mrb[5].mxu0  ;;  %v246_v44 = vadd.f32 %v245_v38, %v86_v35 }
 0x10b   :  { %v265_v42 = vpack.c.bf16 %v261_v37, %v257_v36  ;;  %v248_v45 = vadd.f32 %v247_v41, %v90_v39 }
 0x10c   :  { %v258_v51 = vmax.f32 %v246_v44, 0.0 }
 0x10d   :  { %v251_v46 = vpop.f32.mrb[6].mxu0  ;;  %696 = vmatprep.mubr.bf16.mxu1 %v265_v42  ;;  %v259_v53 = vmax.f32 %v248_v45, 0.0 }
 0x10e   :  { %v252_v47 = vadd.f32 %v251_v46, %v86_v35  ;;  %v253_v48 = vpop.f32.mrb[7].mxu0  ;;  %697 = vmatmul.mubr.bf16.vlgmr.msra.gmra.mrb[0].mxu1 %v264_v40 }
 0x10f   :  { %v254_v49 = vadd.f32 %v253_v48, %v90_v39  ;;  %1029 = vmatpush3.bf16.msra.mxu1 %v1168_v43  ;;  %1044 = vmatprep.mubr.msk.bf16.mxu1 %vm1261_vm1, %v1260_v0 }
 0x110   :  { %v262_v52 = vmax.f32 %v252_v47, 0.0  ;;  %1030 = vmatprep.subr.bf16.mxu1 %v1260_v0 }
 0x111   :  { %v263_v54 = vmax.f32 %v254_v49, 0.0 }
 0x112   :  { %v266_v55 = vpack.c.bf16 %v262_v52, %v258_v51  ;;  %v904_v51 = vstv %s1465_s8 }
 0x113   :  { %v267_v56 = vpack.c.bf16 %v263_v54, %v259_v53  ;;  %1031 = vmatpush3.bf16.msra.mxu1 %v1169_v50 }
 0x114   :  { %1032 = vmatprep.subr.bf16.mxu1 %v1260_v0 }
 0x115   :  { %739 = vmatprep.mubr.bf16.mxu0 %v267_v56 }
 0x116   :  { %740 = vmatmul.mubr.bf16.vlgmr.msra.gmra.mrb[8].mxu0 %v266_v55 }
 0x117   :  { %1033 = vmatpush3.bf16.msra.mxu1 %v1170_v57 }
 0x118   :  { %1034 = vmatprep.subr.bf16.mxu1 %v1260_v0 }
 0x11b   :  { %1035 = vmatpush3.bf16.msra.mxu1 %v1171_v58 }
 0x11c   :  { %1036 = vmatprep.subr.bf16.mxu1 %v1260_v0 }
 0x11f   :  { %1037 = vmatpush3.bf16.msra.mxu1 %v1172_v59 }
 0x120   :  { %1038 = vmatprep.subr.bf16.mxu1 %v1260_v0 }
 0x123   :  { %1039 = vmatpush3.bf16.msra.mxu1 %v1173_v60 }
 0x124   :  { %1040 = vmatprep.subr.bf16.mxu1 %v1260_v0 }
 0x127   :  { %1041 = vmatpush3.bf16.msra.mxu1 %v1174_v61 }
 0x128   :  { %1042 = vmatprep.subr.bf16.mxu1 %v1260_v0 }
 0x12b   :  { %1043 = vmatpush3.bf16.msra.mxu1 %v1175_v62 }
 0x1e1   :  { %v698_v1 = vpop.f32.mrb[0].mxu1 }
 0x1e2   :  { %v700_v2 = vpop.f32.mrb[1].mxu1  ;;  %v699_v8 = vadd.f32 %v698_v1, %v337_v5 }
 0x1e3   :  { %v702_v4 = vpop.f32.mrb[2].mxu1  ;;  %v701_v9 = vadd.f32 %v700_v2, %v341_v3 }
 0x1e4   :  { %v704_v6 = vpop.f32.mrb[3].mxu1  ;;  %v703_v11 = vadd.f32 %v702_v4, %v337_v5 }
 0x1e5   :  { %v705_v7 = vadd.f32 %v704_v6, %v341_v3 }
 0x1e9   :  { %v741_v10 = vpop.f32.mrb[8].mxu0 }
 0x1ea   :  { %v742_v0 = vadd.f32 %v741_v10, %v699_v8  ;;  %v743_v12 = vpop.f32.mrb[9].mxu0 }
 0x1eb   :  { %v744_v13 = vadd.f32 %v743_v12, %v701_v9  ;;  %v745_v14 = vpop.f32.mrb[10].mxu0 }
 0x1ec   :  { %v746_v15 = vadd.f32 %v745_v14, %v703_v11  ;;  %v747_v16 = vpop.f32.mrb[11].mxu0  ;;  %v750_v21 = vmax.f32 %v742_v0, 0.0 }
 0x1ed   :  { %v748_v19 = vadd.f32 %v747_v16, %v705_v7  ;;  %v751_v32 = vmax.f32 %v744_v13, 0.0 }
 0x1ee   :  { %v752_v22 = vmax.f32 %v746_v15, 0.0 }
 0x1ef   :  { %v753_v20 = vmax.f32 %v748_v19, 0.0  ;;  %v897_v34 = vmul.f32 %v1018_v17, %v751_v32 }
 0x1f0   :  { %v754_v23 = vpack.c.bf16 %v752_v22, %v750_v21 }
 0x1f1   :  { %v898_v18 = vmul.f32 %v1018_v17, %v753_v20 }
 0x1f2   :  { %1045 = vmatmul.mubr.bf16.vlgmr.msra.gmra.mrb[4].mxu1 %v754_v23 }
 0x2c5   :  { %v860_v25 = vpop.f32.mrb[4].mxu1 }
 0x2c6   :  { %v861_v26 = vadd.f32 %v1009_v24, %v860_v25  ;;  %v1046_v27 = vpop.f32.mrb[5].mxu1 }
 0x2c7   :  { %v863_v28 = vpop.f32.mrb[6].mxu1 }
 0x2c8   :  { %v864_v29 = vadd.f32 %v1009_v24, %v863_v28  ;;  %v1047_v30 = vpop.f32.mrb[7].mxu1  ;;  %v868_v31 = vsel %vm867_vm2, %v861_v26, -inf }
 0x2c9   :  { %869 = vmax.xlane.f32.xlu0 %v868_v31 }
 0x2ca   :  { %v871_v33 = vsel %vm867_vm2, %v864_v29, -inf }
 0x2cd   :  { %872 = vmax.xlane.f32.xlu0 %v871_v33 }
 0x2d1   :  { %899 = vadd.xlane.f32.xlu0 %v897_v34 }
 0x356   :  { %v870_v35 = vpop.xlane.xlu0 %869 }
 0x357   :  { %v874_v36 = vsub.f32 %v861_v26, %v870_v35 }
 0x359   :  { %v876_v37 = vmul.f32 1.442695, %v874_v36 }
 0x35a   :  { %v873_v38 = vpop.xlane.xlu0 %872 }
 0x35b   :  { %1176 = vpow2.f32 %v876_v37  ;;  %v875_v39 = vsub.f32 %v864_v29, %v873_v38 }
 0x35d   :  { %v878_v40 = vmul.f32 1.442695, %v875_v39 }
 0x35e   :  { %v900_v52 = vpop.xlane.xlu0 %899 }
 0x35f   :  { %1178 = vpow2.f32 %v878_v40  ;;  %v905_v53 = vadd.f32 %v904_v51, %v900_v52 }
 0x365   :  { %v1177_v41 = vpop.eup %1176 }
 0x366   :  { %v880_v42 = vsel %vm867_vm2, %v1177_v41, 0.0 }
 0x367   :  { %881 = vadd.xlane.f32.xlu1 %v880_v42 }
 0x369   :  { %v1179_v43 = vpop.eup %1178 }
 0x36a   :  { %v883_v44 = vsel %vm867_vm2, %v1179_v43, 0.0 }
 0x36b   :  { %884 = vadd.xlane.f32.xlu1 %v883_v44 }
 0x36f   :  { %901 = vadd.xlane.f32.xlu1 %v898_v18 }
 0x3f4   :  { %v882_v45 = vpop.xlane.xlu1 %881 }
 0x3f5   :  { %1180 = vrcp.f32 %v882_v45 }
 0x3f8   :  { %v885_v46 = vpop.xlane.xlu1 %884 }
 0x3f9   :  { %1182 = vrcp.f32 %v885_v46 }
 0x3fc   :  { %v902_v54 = vpop.xlane.xlu1 %901 }
 0x3fd   :  { %v906_v58 = vadd.f32 %v904_v51, %v902_v54 }
 0x3ff   :  { %v1181_v47 = vpop.eup %1180 }
 0x400   :  { %v888_v48 = vmul.f32 %v1181_v47, %v1177_v41 }
 0x402   :  { %909 = vrot.lane.b32.xlu0 %v888_v48, %s1262_s6 }
 0x403   :  { %v1183_v49 = vpop.eup %1182 }
 0x404   :  { %v889_v50 = vmul.f32 %v1183_v49, %v1179_v43 }
 0x406   :  { %911 = vrot.lane.b32.xlu1 %v889_v50, %s1262_s6 }
 0x474   :  { %v910_v55 = vpop.permute.xlu0 %909 }
 0x475   :  { %v916_v56 = vsel %vm915_vm3, %v905_v53, %v910_v55 }
 0x476   :  { %v919_v57 = vsel %vm918_vm4, %v916_v56, 0.0 }
 0x477   :  { %921 = vst [vmem:[#allocation8] sm:$0xff] %v919_v57 }
 0x478   :  { %v912_v59 = vpop.permute.xlu1 %911 }
 0x479   :  { %v917_v60 = vsel %vm915_vm3, %v906_v58, %v912_v59 }
 0x47a   :  { %v920_v61 = vsel %vm918_vm4, %v917_v60, 0.0 }
 0x47b   :  { %922 = vst [vmem:[#allocation8 + $0x8] sm:$0xff] %v920_v61 }
 0x47c   :  { %1239 = shalt.err (!%p1236_p6)
}
 0x47d   :  { %s1240_s12 = scalar_lea.hbm %s1466_s9, 256 }
 0x47e   :  { %p1241_p7 = scmp.ne.s32.totalorder %s1466_s9, %s1240_s12  ;;  %p1244_p8 = scmp.lt.u32.totalorder %s1240_s12, %s1466_s9 }
 0x480   :  { %p1246_p9 = pnand %p1244_p8, %p1241_p7 }
 0x482   :  { %1249 = shalt.err (!%p1246_p9)
}
 0x483   :  { %934 = dma.vmem_to_hbm [thread:$0]  %s929_s30, 256, %s1466_s9, [#allocation5], %s1257_s19, %s1257_s19, %s1258_s20  }
 0x484   :  { %1254 = dma.done.wait [#allocation5], 256  }
 0x485   :  { %1255 = vsyncadd [#allocation5], 4294967040 }
 0x486   :  { %938 = vsyncpa [#allocation4], 1 }
 0x487   :  { %939 = vsyncpa [#allocation7], 1 }
 0x488   :  { %940 = vsyncpa [#allocation5], 1 }

</bundles_post_ra>
